<compile_context>
chip_gen: v7x
topology: tpu7x:2x2x1
jax: 0.10.0
libtpu: 0.0.40
codegen_flags: <defaults>
</compile_context>

<pallas_src>
import functools

import jax
import jax.numpy as jnp
import numpy as np
from jax.experimental import pallas as pl
from jax.experimental.pallas import tpu as pltpu


# ---------------------------------------------------------------------------
# Fused kernel: whole BasicBlock for one image per grid step.
# ---------------------------------------------------------------------------
def _block_kernel(x_ref, w11_ref, w31_ref, w12_ref, w32_ref, b_ref,
                  o_ref, y2pad_ref, *, H, W):
    """Layout: channels on sublanes, flattened spatial (H*W) on lanes.

    x_ref:    (1, C, L) bf16, L = H*W + 2*(W+1); W+1 zero elements pad each end
              of the flattened spatial axis (= 1 zero image row + 1 zero elem),
              which is exactly the halo a SAME 3x3 conv needs.
    w11/w12:  (P, C) / (P, P) bf16  -- 1x1 convs, BN scale folded in.
    w31/w32:  (9, P, C) / (9, P, P) bf16 -- 3x3 conv taps (dy*3+dx).
    b_ref:    (4, P, 1) f32 -- [F1bn1, F2bn1, F1bn2, F2bn2] folded biases.
    o_ref:    (1, P, H*W)   -- lane-dense output block.
    y2pad_ref:(P, L) f32 VMEM scratch -- zero-padded y2 for the 2nd 3x3 conv.
    """
    HW = H * W
    P = w11_ref.shape[0]

    x_im = x_ref[0]                              # (C, L) bf16, stays in VMEM
    xc = x_im[:, W + 1: W + 1 + HW]              # center (C, HW): 1x1 lhs + residual

    # Column-position masks: tap dx=0 reads pixel (w-1) -> invalid at w==0,
    # tap dx=2 reads (w+1) -> invalid at w==W-1 (the flattened shift would
    # otherwise wrap into the neighbouring image row).
    col = jax.lax.broadcasted_iota(jnp.int32, (P, HW), 1) % W
    not_left = col != 0
    not_right = col != (W - 1)

    def conv3x3(src, w_ref, bias):
        # src: (Cs, L) with W+1 zeros padding each end of the HW real region.
        # SAME 3x3 conv == 9 shifted contiguous slices, each a lane-dense GEMM.
        acc = jnp.zeros((P, HW), jnp.float32)
        for dy in range(3):
            for dx in range(3):
                s = dy * W + dx
                contrib = jnp.dot(w_ref[dy * 3 + dx], src[:, s:s + HW],
                                  preferred_element_type=jnp.float32)
                if dx == 0:
                    contrib = jnp.where(not_left, contrib, 0.0)
                elif dx == 2:
                    contrib = jnp.where(not_right, contrib, 0.0)
                acc = acc + contrib
        return acc + bias

    b_f1b1 = b_ref[0]
    b_f2b1 = b_ref[1]
    b_f1b2 = b_ref[2]
    b_f2b2 = b_ref[3]

    # ---- stage 1: first conv + folded BN + ReLU of both branches -----------
    y1 = jnp.maximum(
        jnp.dot(w11_ref[...], xc, preferred_element_type=jnp.float32) + b_f1b1,
        0.0)                                                    # (P, HW) f32
    y2 = jnp.maximum(conv3x3(x_im, w31_ref, b_f2b1), 0.0)       # (P, HW) f32

    # Zero-padded y2 (SAME padding of the second 3x3 conv) -- VMEM only.
    y2pad_ref[...] = jnp.zeros(y2pad_ref.shape, jnp.float32)
    y2pad_ref[:, W + 1: W + 1 + HW] = y2
    y2pad = y2pad_ref[...]

    # ---- stage 2: second conv + folded BN, product, residual, ReLU ---------
    z1 = jnp.dot(w12_ref[...], y1, preferred_element_type=jnp.float32) + b_f1b2
    z2 = conv3x3(y2pad, w32_ref, b_f2b2)

    out = jnp.maximum(z1 * z2 + xc.astype(jnp.float32), 0.0)
    o_ref[0] = out.astype(o_ref.dtype)


# ---------------------------------------------------------------------------
# pallas_call wrapper
# ---------------------------------------------------------------------------
def _fused_block_call(xf, w11, w31, w12, w32, bias, *, H, W, out_dtype):
    n, c, L = xf.shape
    p = w11.shape[0]
    hw = H * W
    kernel = functools.partial(_block_kernel, H=H, W=W)
    return pl.pallas_call(
        kernel,
        out_shape=jax.ShapeDtypeStruct((n, p, hw), out_dtype),
        grid=(n,),
        in_specs=[
            pl.BlockSpec((1, c, L), lambda i: (i, 0, 0)),      # image block
            pl.BlockSpec((p, c), lambda i: (0, 0)),            # W_f1c1 (scaled)
            pl.BlockSpec((9, p, c), lambda i: (0, 0, 0)),      # W_f2c1 (scaled)
            pl.BlockSpec((p, p), lambda i: (0, 0)),            # W_f1c2 (scaled)
            pl.BlockSpec((9, p, p), lambda i: (0, 0, 0)),      # W_f2c2 (scaled)
            pl.BlockSpec((4, p, 1), lambda i: (0, 0, 0)),      # packed biases
        ],
        out_specs=pl.BlockSpec((1, p, hw), lambda i: (i, 0, 0)),
        scratch_shapes=[pltpu.VMEM((p, L), jnp.float32)],
        compiler_params=pltpu.CompilerParams(
            dimension_semantics=("parallel",),
            # v5e's default scoped VMEM is only 16 MiB; stay under v7x's 64 MiB.
            vmem_limit_bytes=48 * 1024 * 1024),
    )(xf, w11, w31, w12, w32, bias)


def _fold_bn(gamma, beta, mean, var, eps):
    scale = gamma / jnp.sqrt(var + eps)
    bias = beta - mean * scale
    return scale.astype(jnp.float32), bias.astype(jnp.float32)


class BasicBlock:
    """JAX/Pallas port of the two-branch (1x1 / 3x3) BasicBlock."""

    expansion = 1

    def __init__(self, inplanes, planes, stride=1, downsample=None,
                 key=None, eps=1e-5):
        if stride != 1 or downsample is not None:
            # TODO(synk): stride>1 and custom downsample modules are not ported;
            # only the default stride=1, identity-residual block is lowered.
            raise NotImplementedError("only stride=1, downsample=None is ported")
        assert inplanes == planes, "identity residual requires inplanes == planes"
        self.inplanes, self.planes, self.stride = inplanes, planes, stride

        key = jax.random.PRNGKey(0) if key is None else key
        kc = jax.random.split(key, 8)

        def conv_w(k, cout, cin, kh, kw):
            fan_in = cin * kh * kw
            w = jax.random.normal(k, (cout, cin, kh, kw), jnp.float32)
            return w * jnp.sqrt(2.0 / fan_in)

        def bn_p(k, ch):
            k1, k2, k3, k4 = jax.random.split(k, 4)
            gamma = 1.0 + 0.1 * jax.random.normal(k1, (ch,), jnp.float32)
            beta = 0.1 * jax.random.normal(k2, (ch,), jnp.float32)
            mean = 0.1 * jax.random.normal(k3, (ch,), jnp.float32)
            var = jax.random.uniform(k4, (ch,), jnp.float32, 0.5, 1.5)
            return gamma, beta, mean, var

        # TODO(synk): BatchNorm is lowered in inference mode (folded running
        # stats); training-mode batch statistics are not computed in-kernel.
        s11, b11 = _fold_bn(*bn_p(kc[4], planes), eps)   # F1bn1
        s12, b12 = _fold_bn(*bn_p(kc[5], planes), eps)   # F1bn2
        s21, b21 = _fold_bn(*bn_p(kc[6], planes), eps)   # F2bn1
        s22, b22 = _fold_bn(*bn_p(kc[7], planes), eps)   # F2bn2

        def fold(w_oihw, scale):
            # BN scale folded into the conv weights, then rounded to bf16.
            # These bf16 weights are the parameters of record (used by both the
            # Pallas kernel and the f32 reference).
            return (w_oihw * scale[:, None, None, None]).astype(jnp.bfloat16)

        self._w_f1c1 = fold(conv_w(kc[0], planes, inplanes, 1, 1), s11)
        self._w_f1c2 = fold(conv_w(kc[1], planes, planes, 1, 1), s12)
        self._w_f2c1 = fold(conv_w(kc[2], planes, inplanes, 3, 3), s21)
        self._w_f2c2 = fold(conv_w(kc[3], planes, planes, 3, 3), s22)

        # Kernel-layout weights: 1x1 -> (P, C); 3x3 -> (9, P, C), tap = dy*3+dx.
        self.w11 = self._w_f1c1[:, :, 0, 0]
        self.w12 = self._w_f1c2[:, :, 0, 0]
        self.w31 = jnp.transpose(self._w_f2c1, (2, 3, 0, 1)).reshape(
            9, planes, inplanes)
        self.w32 = jnp.transpose(self._w_f2c2, (2, 3, 0, 1)).reshape(
            9, planes, planes)
        # Packed folded biases, broadcast along lanes inside the kernel.
        self.bias = jnp.stack([b11, b21, b12, b22])[..., None]   # (4, P, 1) f32

    # -- Pallas forward ------------------------------------------------------
    def forward(self, x):
        n, c, h, w = x.shape
        assert c == self.inplanes
        hw = h * w
        # NCHW -> (N, C, H*W) (free reshape), then pad W+1 zeros on each end of
        # the flattened spatial axis: that is the full halo a SAME 3x3 conv
        # needs in flattened form (+13% bytes instead of the old 9x im2col).
        xf = x.reshape(n, c, hw)
        xf = jnp.pad(xf, ((0, 0), (0, 0), (w + 1, w + 1))).astype(jnp.bfloat16)

        out = _fused_block_call(xf, self.w11, self.w31, self.w12, self.w32,
                                self.bias, H=h, W=w, out_dtype=x.dtype)
        # (N, P, H*W) -> NCHW is a free reshape: no host transpose needed.
        return out.reshape(n, self.planes, h, w)

    __call__ = forward

    # -- pure-JAX reference (lax conv in f32, same folded parameters) ---------
    def reference(self, x):
        dn = ("NCHW", "OIHW", "NCHW")
        hp = jax.lax.Precision.HIGHEST

        def cv(v, w_oihw, bias):
            y = jax.lax.conv_general_dilated(
                v, w_oihw.astype(jnp.float32), (1, 1), "SAME",
                dimension_numbers=dn, precision=hp)
            return y + bias.reshape(1, -1, 1, 1)

        b11, b21, b12, b22 = [self.bias[i, :, 0] for i in range(4)]
        y1 = jnp.maximum(cv(x, self._w_f1c1, b11), 0.0)
        y2 = jnp.maximum(cv(x, self._w_f2c1, b21), 0.0)
        z1 = cv(y1, self._w_f1c2, b12)
        z2 = cv(y2, self._w_f2c2, b22)
        return jnp.maximum(z1 * z2 + x, 0.0)


if __name__ == "__main__":
    key = jax.random.PRNGKey(0)
    kx, kp = jax.random.split(key)

    # Small NCHW input.  batch=8 gives the 1-D "parallel" grid >= 8 steps
    # (>= 4 per TensorCore on v7x) so BlockSpec double-buffering can overlap.
    # TODO(synk): for very small batches, additionally tile H (with a manual
    # halo DMA) to keep the grid-step count up.
    N, C, H, W = 8, 32, 16, 16
    x = jax.random.normal(kx, (N, C, H, W), dtype=jnp.float32)
    # Round the input to bf16-representable values so the kernel's bf16 input
    # stream is a lossless cast and the f32 reference is directly comparable.
    x = x.astype(jnp.bfloat16).astype(jnp.float32)

    block = BasicBlock(inplanes=C, planes=C, key=kp)

    out = jax.block_until_ready(jax.jit(block.forward)(x))
    ref = jax.block_until_ready(jax.jit(block.reference)(x))

    assert out.shape == (N, C, H, W)
    np.testing.assert_allclose(np.asarray(out, np.float32),
                               np.asarray(ref, np.float32),
                               rtol=2e-2, atol=2e-2)
    print("KERNEL_OK")
</pallas_src>

<mosaic_0001>
module attributes {stable_mosaic.version = 11 : i64} {
  func.func @_block_kernel(%arg0: i32, %arg1: memref<1x32x290xbf16, #tpu.memory_space<vmem>>, %arg2: memref<32x32xbf16, #tpu.memory_space<vmem>>, %arg3: memref<9x32x32xbf16, #tpu.memory_space<vmem>>, %arg4: memref<32x32xbf16, #tpu.memory_space<vmem>>, %arg5: memref<9x32x32xbf16, #tpu.memory_space<vmem>>, %arg6: memref<4x32x1xf32, #tpu.memory_space<vmem>>, %arg7: memref<1x32x256xf32, #tpu.memory_space<vmem>>, %arg8: memref<32x290xf32, #tpu.memory_space<vmem>>) attributes {dimension_semantics = [#tpu.dimension_semantics<parallel>], iteration_bounds = array<i64: 8>, scalar_prefetch = 0 : i64, scratch_operands = 1 : i64, tpu.core_type = #tpu.core_type<tc>, window_params = [{transform_indices = @transform_0, window_bounds = array<i64: 1, 32, 290>}, {pipeline_mode = #tpu.pipeline_mode<synchronous>, transform_indices = @transform_1, window_bounds = array<i64: 32, 32>}, {pipeline_mode = #tpu.pipeline_mode<synchronous>, transform_indices = @transform_2, window_bounds = array<i64: 9, 32, 32>}, {pipeline_mode = #tpu.pipeline_mode<synchronous>, transform_indices = @transform_3, window_bounds = array<i64: 32, 32>}, {pipeline_mode = #tpu.pipeline_mode<synchronous>, transform_indices = @transform_4, window_bounds = array<i64: 9, 32, 32>}, {pipeline_mode = #tpu.pipeline_mode<synchronous>, transform_indices = @transform_5, window_bounds = array<i64: 4, 32, 1>}, {transform_indices = @transform_6, window_bounds = array<i64: 1, 32, 256>}]} {
    %c0 = arith.constant 0 : index
    %c0_0 = arith.constant 0 : index
    %c0_1 = arith.constant 0 : index
    %0 = vector.load %arg1[%c0, %c0_0, %c0_1] : memref<1x32x290xbf16, #tpu.memory_space<vmem>>, vector<1x32x290xbf16>
    %1 = vector.shape_cast %0 : vector<1x32x290xbf16> to vector<32x290xbf16>
    %2 = vector.extract_strided_slice %1 {offsets = [0, 17], sizes = [32, 256], strides = [1, 1]} : vector<32x290xbf16> to vector<32x256xbf16>
    %3 = tpu.iota {dimensions = array<i32: 1>} : vector<32x256xi32>
    %c16_i32 = arith.constant 16 : i32
    %c0_i32 = arith.constant 0 : i32
    %4 = arith.cmpi eq, %c16_i32, %c0_i32 : i32
    %c1_i32 = arith.constant 1 : i32
    %5 = arith.select %4, %c1_i32, %c16_i32 : i32
    %6 = vector.broadcast %5 : i32 to vector<32x256xi32>
    %7 = arith.remsi %3, %6 : vector<32x256xi32>
    %c0_i32_2 = arith.constant 0 : i32
    %8 = vector.broadcast %c0_i32_2 : i32 to vector<32x256xi32>
    %9 = arith.cmpi ne, %7, %8 : vector<32x256xi32>
    %c0_i32_3 = arith.constant 0 : i32
    %10 = vector.broadcast %c0_i32_3 : i32 to vector<32x256xi32>
    %11 = arith.cmpi slt, %7, %10 : vector<32x256xi32>
    %c0_i32_4 = arith.constant 0 : i32
    %12 = arith.cmpi slt, %5, %c0_i32_4 : i32
    %13 = vector.broadcast %12 : i1 to vector<32x256xi1>
    %14 = vector.broadcast %13 : vector<32x256xi1> to vector<32x256xi1>
    %15 = arith.xori %11, %14 : vector<32x256xi1>
    %16 = arith.andi %15, %9 : vector<32x256xi1>
    %17 = vector.broadcast %5 : i32 to vector<32x256xi32>
    %18 = arith.addi %7, %17 : vector<32x256xi32>
    %19 = arith.select %16, %18, %7 : vector<32x256xi1>, vector<32x256xi32>
    %c0_i32_5 = arith.constant 0 : i32
    %20 = vector.broadcast %c0_i32_5 : i32 to vector<32x256xi32>
    %21 = arith.cmpi ne, %19, %20 : vector<32x256xi32>
    %c15_i32 = arith.constant 15 : i32
    %22 = vector.broadcast %c15_i32 : i32 to vector<32x256xi32>
    %23 = arith.cmpi ne, %19, %22 : vector<32x256xi32>
    %c0_6 = arith.constant 0 : index
    %c0_7 = arith.constant 0 : index
    %c0_8 = arith.constant 0 : index
    %24 = vector.load %arg6[%c0_6, %c0_7, %c0_8] : memref<4x32x1xf32, #tpu.memory_space<vmem>>, vector<1x32x1xf32>
    %25 = vector.shape_cast %24 : vector<1x32x1xf32> to vector<32x1xf32>
    %c1 = arith.constant 1 : index
    %c0_9 = arith.constant 0 : index
    %c0_10 = arith.constant 0 : index
    %26 = vector.load %arg6[%c1, %c0_9, %c0_10] : memref<4x32x1xf32, #tpu.memory_space<vmem>>, vector<1x32x1xf32>
    %27 = vector.shape_cast %26 : vector<1x32x1xf32> to vector<32x1xf32>
    %c2 = arith.constant 2 : index
    %c0_11 = arith.constant 0 : index
    %c0_12 = arith.constant 0 : index
    %28 = vector.load %arg6[%c2, %c0_11, %c0_12] : memref<4x32x1xf32, #tpu.memory_space<vmem>>, vector<1x32x1xf32>
    %29 = vector.shape_cast %28 : vector<1x32x1xf32> to vector<32x1xf32>
    %c3 = arith.constant 3 : index
    %c0_13 = arith.constant 0 : index
    %c0_14 = arith.constant 0 : index
    %30 = vector.load %arg6[%c3, %c0_13, %c0_14] : memref<4x32x1xf32, #tpu.memory_space<vmem>>, vector<1x32x1xf32>
    %31 = vector.shape_cast %30 : vector<1x32x1xf32> to vector<32x1xf32>
    %c0_15 = arith.constant 0 : index
    %c0_16 = arith.constant 0 : index
    %32 = vector.load %arg2[%c0_15, %c0_16] : memref<32x32xbf16, #tpu.memory_space<vmem>>, vector<32x32xbf16>
    %cst = arith.constant dense<0.000000e+00> : vector<32x256xf32>
    %33 = tpu.matmul %32, %2, %cst {dimension_numbers = #tpu.dot_dimension_numbers<[1], [0], [0], [1], [0, 0, 1, 1], [], []>} : vector<32x32xbf16>, vector<32x256xbf16>, vector<32x256xf32> -> vector<32x256xf32>
    %34 = vector.broadcast %25 : vector<32x1xf32> to vector<32x256xf32>
    %35 = arith.addf %33, %34 : vector<32x256xf32>
    %cst_17 = arith.constant 0.000000e+00 : f32
    %36 = vector.broadcast %cst_17 : f32 to vector<32x256xf32>
    %37 = arith.maximumf %35, %36 : vector<32x256xf32>
    %cst_18 = arith.constant 0.000000e+00 : f32
    %38 = vector.broadcast %cst_18 : f32 to vector<32x256xf32>
    %c0_19 = arith.constant 0 : index
    %c0_20 = arith.constant 0 : index
    %c0_21 = arith.constant 0 : index
    %39 = vector.load %arg3[%c0_19, %c0_20, %c0_21] : memref<9x32x32xbf16, #tpu.memory_space<vmem>>, vector<1x32x32xbf16>
    %40 = vector.shape_cast %39 : vector<1x32x32xbf16> to vector<32x32xbf16>
    %41 = vector.extract_strided_slice %1 {offsets = [0, 0], sizes = [32, 256], strides = [1, 1]} : vector<32x290xbf16> to vector<32x256xbf16>
    %cst_22 = arith.constant dense<0.000000e+00> : vector<32x256xf32>
    %42 = tpu.matmul %40, %41, %cst_22 {dimension_numbers = #tpu.dot_dimension_numbers<[1], [0], [0], [1], [0, 0, 1, 1], [], []>} : vector<32x32xbf16>, vector<32x256xbf16>, vector<32x256xf32> -> vector<32x256xf32>
    %cst_23 = arith.constant 0.000000e+00 : f32
    %43 = vector.broadcast %cst_23 : f32 to vector<32x256xf32>
    %44 = arith.select %21, %42, %43 : vector<32x256xi1>, vector<32x256xf32>
    %45 = arith.addf %38, %44 : vector<32x256xf32>
    %c1_24 = arith.constant 1 : index
    %c0_25 = arith.constant 0 : index
    %c0_26 = arith.constant 0 : index
    %46 = vector.load %arg3[%c1_24, %c0_25, %c0_26] : memref<9x32x32xbf16, #tpu.memory_space<vmem>>, vector<1x32x32xbf16>
    %47 = vector.shape_cast %46 : vector<1x32x32xbf16> to vector<32x32xbf16>
    %48 = vector.extract_strided_slice %1 {offsets = [0, 1], sizes = [32, 256], strides = [1, 1]} : vector<32x290xbf16> to vector<32x256xbf16>
    %cst_27 = arith.constant dense<0.000000e+00> : vector<32x256xf32>
    %49 = tpu.matmul %47, %48, %cst_27 {dimension_numbers = #tpu.dot_dimension_numbers<[1], [0], [0], [1], [0, 0, 1, 1], [], []>} : vector<32x32xbf16>, vector<32x256xbf16>, vector<32x256xf32> -> vector<32x256xf32>
    %50 = arith.addf %45, %49 : vector<32x256xf32>
    %c2_28 = arith.constant 2 : index
    %c0_29 = arith.constant 0 : index
    %c0_30 = arith.constant 0 : index
    %51 = vector.load %arg3[%c2_28, %c0_29, %c0_30] : memref<9x32x32xbf16, #tpu.memory_space<vmem>>, vector<1x32x32xbf16>
    %52 = vector.shape_cast %51 : vector<1x32x32xbf16> to vector<32x32xbf16>
    %53 = vector.extract_strided_slice %1 {offsets = [0, 2], sizes = [32, 256], strides = [1, 1]} : vector<32x290xbf16> to vector<32x256xbf16>
    %cst_31 = arith.constant dense<0.000000e+00> : vector<32x256xf32>
    %54 = tpu.matmul %52, %53, %cst_31 {dimension_numbers = #tpu.dot_dimension_numbers<[1], [0], [0], [1], [0, 0, 1, 1], [], []>} : vector<32x32xbf16>, vector<32x256xbf16>, vector<32x256xf32> -> vector<32x256xf32>
    %cst_32 = arith.constant 0.000000e+00 : f32
    %55 = vector.broadcast %cst_32 : f32 to vector<32x256xf32>
    %56 = arith.select %23, %54, %55 : vector<32x256xi1>, vector<32x256xf32>
    %57 = arith.addf %50, %56 : vector<32x256xf32>
    %c3_33 = arith.constant 3 : index
    %c0_34 = arith.constant 0 : index
    %c0_35 = arith.constant 0 : index
    %58 = vector.load %arg3[%c3_33, %c0_34, %c0_35] : memref<9x32x32xbf16, #tpu.memory_space<vmem>>, vector<1x32x32xbf16>
    %59 = vector.shape_cast %58 : vector<1x32x32xbf16> to vector<32x32xbf16>
    %60 = vector.extract_strided_slice %1 {offsets = [0, 16], sizes = [32, 256], strides = [1, 1]} : vector<32x290xbf16> to vector<32x256xbf16>
    %cst_36 = arith.constant dense<0.000000e+00> : vector<32x256xf32>
    %61 = tpu.matmul %59, %60, %cst_36 {dimension_numbers = #tpu.dot_dimension_numbers<[1], [0], [0], [1], [0, 0, 1, 1], [], []>} : vector<32x32xbf16>, vector<32x256xbf16>, vector<32x256xf32> -> vector<32x256xf32>
    %cst_37 = arith.constant 0.000000e+00 : f32
    %62 = vector.broadcast %cst_37 : f32 to vector<32x256xf32>
    %63 = arith.select %21, %61, %62 : vector<32x256xi1>, vector<32x256xf32>
    %64 = arith.addf %57, %63 : vector<32x256xf32>
    %c4 = arith.constant 4 : index
    %c0_38 = arith.constant 0 : index
    %c0_39 = arith.constant 0 : index
    %65 = vector.load %arg3[%c4, %c0_38, %c0_39] : memref<9x32x32xbf16, #tpu.memory_space<vmem>>, vector<1x32x32xbf16>
    %66 = vector.shape_cast %65 : vector<1x32x32xbf16> to vector<32x32xbf16>
    %67 = vector.extract_strided_slice %1 {offsets = [0, 17], sizes = [32, 256], strides = [1, 1]} : vector<32x290xbf16> to vector<32x256xbf16>
    %cst_40 = arith.constant dense<0.000000e+00> : vector<32x256xf32>
    %68 = tpu.matmul %66, %67, %cst_40 {dimension_numbers = #tpu.dot_dimension_numbers<[1], [0], [0], [1], [0, 0, 1, 1], [], []>} : vector<32x32xbf16>, vector<32x256xbf16>, vector<32x256xf32> -> vector<32x256xf32>
    %69 = arith.addf %64, %68 : vector<32x256xf32>
    %c5 = arith.constant 5 : index
    %c0_41 = arith.constant 0 : index
    %c0_42 = arith.constant 0 : index
    %70 = vector.load %arg3[%c5, %c0_41, %c0_42] : memref<9x32x32xbf16, #tpu.memory_space<vmem>>, vector<1x32x32xbf16>
    %71 = vector.shape_cast %70 : vector<1x32x32xbf16> to vector<32x32xbf16>
    %72 = vector.extract_strided_slice %1 {offsets = [0, 18], sizes = [32, 256], strides = [1, 1]} : vector<32x290xbf16> to vector<32x256xbf16>
    %cst_43 = arith.constant dense<0.000000e+00> : vector<32x256xf32>
    %73 = tpu.matmul %71, %72, %cst_43 {dimension_numbers = #tpu.dot_dimension_numbers<[1], [0], [0], [1], [0, 0, 1, 1], [], []>} : vector<32x32xbf16>, vector<32x256xbf16>, vector<32x256xf32> -> vector<32x256xf32>
    %cst_44 = arith.constant 0.000000e+00 : f32
    %74 = vector.broadcast %cst_44 : f32 to vector<32x256xf32>
    %75 = arith.select %23, %73, %74 : vector<32x256xi1>, vector<32x256xf32>
    %76 = arith.addf %69, %75 : vector<32x256xf32>
    %c6 = arith.constant 6 : index
    %c0_45 = arith.constant 0 : index
    %c0_46 = arith.constant 0 : index
    %77 = vector.load %arg3[%c6, %c0_45, %c0_46] : memref<9x32x32xbf16, #tpu.memory_space<vmem>>, vector<1x32x32xbf16>
    %78 = vector.shape_cast %77 : vector<1x32x32xbf16> to vector<32x32xbf16>
    %79 = vector.extract_strided_slice %1 {offsets = [0, 32], sizes = [32, 256], strides = [1, 1]} : vector<32x290xbf16> to vector<32x256xbf16>
    %cst_47 = arith.constant dense<0.000000e+00> : vector<32x256xf32>
    %80 = tpu.matmul %78, %79, %cst_47 {dimension_numbers = #tpu.dot_dimension_numbers<[1], [0], [0], [1], [0, 0, 1, 1], [], []>} : vector<32x32xbf16>, vector<32x256xbf16>, vector<32x256xf32> -> vector<32x256xf32>
    %cst_48 = arith.constant 0.000000e+00 : f32
    %81 = vector.broadcast %cst_48 : f32 to vector<32x256xf32>
    %82 = arith.select %21, %80, %81 : vector<32x256xi1>, vector<32x256xf32>
    %83 = arith.addf %76, %82 : vector<32x256xf32>
    %c7 = arith.constant 7 : index
    %c0_49 = arith.constant 0 : index
    %c0_50 = arith.constant 0 : index
    %84 = vector.load %arg3[%c7, %c0_49, %c0_50] : memref<9x32x32xbf16, #tpu.memory_space<vmem>>, vector<1x32x32xbf16>
    %85 = vector.shape_cast %84 : vector<1x32x32xbf16> to vector<32x32xbf16>
    %86 = vector.extract_strided_slice %1 {offsets = [0, 33], sizes = [32, 256], strides = [1, 1]} : vector<32x290xbf16> to vector<32x256xbf16>
    %cst_51 = arith.constant dense<0.000000e+00> : vector<32x256xf32>
    %87 = tpu.matmul %85, %86, %cst_51 {dimension_numbers = #tpu.dot_dimension_numbers<[1], [0], [0], [1], [0, 0, 1, 1], [], []>} : vector<32x32xbf16>, vector<32x256xbf16>, vector<32x256xf32> -> vector<32x256xf32>
    %88 = arith.addf %83, %87 : vector<32x256xf32>
    %c8 = arith.constant 8 : index
    %c0_52 = arith.constant 0 : index
    %c0_53 = arith.constant 0 : index
    %89 = vector.load %arg3[%c8, %c0_52, %c0_53] : memref<9x32x32xbf16, #tpu.memory_space<vmem>>, vector<1x32x32xbf16>
    %90 = vector.shape_cast %89 : vector<1x32x32xbf16> to vector<32x32xbf16>
    %91 = vector.extract_strided_slice %1 {offsets = [0, 34], sizes = [32, 256], strides = [1, 1]} : vector<32x290xbf16> to vector<32x256xbf16>
    %cst_54 = arith.constant dense<0.000000e+00> : vector<32x256xf32>
    %92 = tpu.matmul %90, %91, %cst_54 {dimension_numbers = #tpu.dot_dimension_numbers<[1], [0], [0], [1], [0, 0, 1, 1], [], []>} : vector<32x32xbf16>, vector<32x256xbf16>, vector<32x256xf32> -> vector<32x256xf32>
    %cst_55 = arith.constant 0.000000e+00 : f32
    %93 = vector.broadcast %cst_55 : f32 to vector<32x256xf32>
    %94 = arith.select %23, %92, %93 : vector<32x256xi1>, vector<32x256xf32>
    %95 = arith.addf %88, %94 : vector<32x256xf32>
    %96 = vector.broadcast %27 : vector<32x1xf32> to vector<32x256xf32>
    %97 = arith.addf %95, %96 : vector<32x256xf32>
    %cst_56 = arith.constant 0.000000e+00 : f32
    %98 = vector.broadcast %cst_56 : f32 to vector<32x256xf32>
    %99 = arith.maximumf %97, %98 : vector<32x256xf32>
    %cst_57 = arith.constant 0.000000e+00 : f32
    %100 = vector.broadcast %cst_57 : f32 to vector<32x290xf32>
    %c0_58 = arith.constant 0 : index
    %c0_59 = arith.constant 0 : index
    %101 = vector.load %arg8[%c0_58, %c0_59] : memref<32x290xf32, #tpu.memory_space<vmem>>, vector<32x290xf32>
    tpu.vector_store %arg8[%c0_58, %c0_59], %100 {strides = array<i32>} : memref<32x290xf32, #tpu.memory_space<vmem>>, vector<32x290xf32>,
    %c0_60 = arith.constant 0 : index
    %c17 = arith.constant 17 : index
    %102 = vector.load %arg8[%c0_60, %c17] : memref<32x290xf32, #tpu.memory_space<vmem>>, vector<32x256xf32>
    tpu.vector_store %arg8[%c0_60, %c17], %99 {strides = array<i32>} : memref<32x290xf32, #tpu.memory_space<vmem>>, vector<32x256xf32>,
    %c0_61 = arith.constant 0 : index
    %c0_62 = arith.constant 0 : index
    %103 = vector.load %arg8[%c0_61, %c0_62] : memref<32x290xf32, #tpu.memory_space<vmem>>, vector<32x290xf32>
    %c0_63 = arith.constant 0 : index
    %c0_64 = arith.constant 0 : index
    %104 = vector.load %arg4[%c0_63, %c0_64] : memref<32x32xbf16, #tpu.memory_space<vmem>>, vector<32x32xbf16>
    %cst_65 = arith.constant dense<0.000000e+00> : vector<32x256xf32>
    %105 = tpu.matmul %104, %37, %cst_65 {dimension_numbers = #tpu.dot_dimension_numbers<[1], [0], [0], [1], [0, 0, 1, 1], [], []>} : vector<32x32xbf16>, vector<32x256xf32>, vector<32x256xf32> -> vector<32x256xf32>
    %106 = vector.broadcast %29 : vector<32x1xf32> to vector<32x256xf32>
    %107 = arith.addf %105, %106 : vector<32x256xf32>
    %cst_66 = arith.constant 0.000000e+00 : f32
    %108 = vector.broadcast %cst_66 : f32 to vector<32x256xf32>
    %c0_67 = arith.constant 0 : index
    %c0_68 = arith.constant 0 : index
    %c0_69 = arith.constant 0 : index
    %109 = vector.load %arg5[%c0_67, %c0_68, %c0_69] : memref<9x32x32xbf16, #tpu.memory_space<vmem>>, vector<1x32x32xbf16>
    %110 = vector.shape_cast %109 : vector<1x32x32xbf16> to vector<32x32xbf16>
    %111 = vector.extract_strided_slice %103 {offsets = [0, 0], sizes = [32, 256], strides = [1, 1]} : vector<32x290xf32> to vector<32x256xf32>
    %cst_70 = arith.constant dense<0.000000e+00> : vector<32x256xf32>
    %112 = tpu.matmul %110, %111, %cst_70 {dimension_numbers = #tpu.dot_dimension_numbers<[1], [0], [0], [1], [0, 0, 1, 1], [], []>} : vector<32x32xbf16>, vector<32x256xf32>, vector<32x256xf32> -> vector<32x256xf32>
    %cst_71 = arith.constant 0.000000e+00 : f32
    %113 = vector.broadcast %cst_71 : f32 to vector<32x256xf32>
    %114 = arith.select %21, %112, %113 : vector<32x256xi1>, vector<32x256xf32>
    %115 = arith.addf %108, %114 : vector<32x256xf32>
    %c1_72 = arith.constant 1 : index
    %c0_73 = arith.constant 0 : index
    %c0_74 = arith.constant 0 : index
    %116 = vector.load %arg5[%c1_72, %c0_73, %c0_74] : memref<9x32x32xbf16, #tpu.memory_space<vmem>>, vector<1x32x32xbf16>
    %117 = vector.shape_cast %116 : vector<1x32x32xbf16> to vector<32x32xbf16>
    %118 = vector.extract_strided_slice %103 {offsets = [0, 1], sizes = [32, 256], strides = [1, 1]} : vector<32x290xf32> to vector<32x256xf32>
    %cst_75 = arith.constant dense<0.000000e+00> : vector<32x256xf32>
    %119 = tpu.matmul %117, %118, %cst_75 {dimension_numbers = #tpu.dot_dimension_numbers<[1], [0], [0], [1], [0, 0, 1, 1], [], []>} : vector<32x32xbf16>, vector<32x256xf32>, vector<32x256xf32> -> vector<32x256xf32>
    %120 = arith.addf %115, %119 : vector<32x256xf32>
    %c2_76 = arith.constant 2 : index
    %c0_77 = arith.constant 0 : index
    %c0_78 = arith.constant 0 : index
    %121 = vector.load %arg5[%c2_76, %c0_77, %c0_78] : memref<9x32x32xbf16, #tpu.memory_space<vmem>>, vector<1x32x32xbf16>
    %122 = vector.shape_cast %121 : vector<1x32x32xbf16> to vector<32x32xbf16>
    %123 = vector.extract_strided_slice %103 {offsets = [0, 2], sizes = [32, 256], strides = [1, 1]} : vector<32x290xf32> to vector<32x256xf32>
    %cst_79 = arith.constant dense<0.000000e+00> : vector<32x256xf32>
    %124 = tpu.matmul %122, %123, %cst_79 {dimension_numbers = #tpu.dot_dimension_numbers<[1], [0], [0], [1], [0, 0, 1, 1], [], []>} : vector<32x32xbf16>, vector<32x256xf32>, vector<32x256xf32> -> vector<32x256xf32>
    %cst_80 = arith.constant 0.000000e+00 : f32
    %125 = vector.broadcast %cst_80 : f32 to vector<32x256xf32>
    %126 = arith.select %23, %124, %125 : vector<32x256xi1>, vector<32x256xf32>
    %127 = arith.addf %120, %126 : vector<32x256xf32>
    %c3_81 = arith.constant 3 : index
    %c0_82 = arith.constant 0 : index
    %c0_83 = arith.constant 0 : index
    %128 = vector.load %arg5[%c3_81, %c0_82, %c0_83] : memref<9x32x32xbf16, #tpu.memory_space<vmem>>, vector<1x32x32xbf16>
    %129 = vector.shape_cast %128 : vector<1x32x32xbf16> to vector<32x32xbf16>
    %130 = vector.extract_strided_slice %103 {offsets = [0, 16], sizes = [32, 256], strides = [1, 1]} : vector<32x290xf32> to vector<32x256xf32>
    %cst_84 = arith.constant dense<0.000000e+00> : vector<32x256xf32>
    %131 = tpu.matmul %129, %130, %cst_84 {dimension_numbers = #tpu.dot_dimension_numbers<[1], [0], [0], [1], [0, 0, 1, 1], [], []>} : vector<32x32xbf16>, vector<32x256xf32>, vector<32x256xf32> -> vector<32x256xf32>
    %cst_85 = arith.constant 0.000000e+00 : f32
    %132 = vector.broadcast %cst_85 : f32 to vector<32x256xf32>
    %133 = arith.select %21, %131, %132 : vector<32x256xi1>, vector<32x256xf32>
    %134 = arith.addf %127, %133 : vector<32x256xf32>
    %c4_86 = arith.constant 4 : index
    %c0_87 = arith.constant 0 : index
    %c0_88 = arith.constant 0 : index
    %135 = vector.load %arg5[%c4_86, %c0_87, %c0_88] : memref<9x32x32xbf16, #tpu.memory_space<vmem>>, vector<1x32x32xbf16>
    %136 = vector.shape_cast %135 : vector<1x32x32xbf16> to vector<32x32xbf16>
    %137 = vector.extract_strided_slice %103 {offsets = [0, 17], sizes = [32, 256], strides = [1, 1]} : vector<32x290xf32> to vector<32x256xf32>
    %cst_89 = arith.constant dense<0.000000e+00> : vector<32x256xf32>
    %138 = tpu.matmul %136, %137, %cst_89 {dimension_numbers = #tpu.dot_dimension_numbers<[1], [0], [0], [1], [0, 0, 1, 1], [], []>} : vector<32x32xbf16>, vector<32x256xf32>, vector<32x256xf32> -> vector<32x256xf32>
    %139 = arith.addf %134, %138 : vector<32x256xf32>
    %c5_90 = arith.constant 5 : index
    %c0_91 = arith.constant 0 : index
    %c0_92 = arith.constant 0 : index
    %140 = vector.load %arg5[%c5_90, %c0_91, %c0_92] : memref<9x32x32xbf16, #tpu.memory_space<vmem>>, vector<1x32x32xbf16>
    %141 = vector.shape_cast %140 : vector<1x32x32xbf16> to vector<32x32xbf16>
    %142 = vector.extract_strided_slice %103 {offsets = [0, 18], sizes = [32, 256], strides = [1, 1]} : vector<32x290xf32> to vector<32x256xf32>
    %cst_93 = arith.constant dense<0.000000e+00> : vector<32x256xf32>
    %143 = tpu.matmul %141, %142, %cst_93 {dimension_numbers = #tpu.dot_dimension_numbers<[1], [0], [0], [1], [0, 0, 1, 1], [], []>} : vector<32x32xbf16>, vector<32x256xf32>, vector<32x256xf32> -> vector<32x256xf32>
    %cst_94 = arith.constant 0.000000e+00 : f32
    %144 = vector.broadcast %cst_94 : f32 to vector<32x256xf32>
    %145 = arith.select %23, %143, %144 : vector<32x256xi1>, vector<32x256xf32>
    %146 = arith.addf %139, %145 : vector<32x256xf32>
    %c6_95 = arith.constant 6 : index
    %c0_96 = arith.constant 0 : index
    %c0_97 = arith.constant 0 : index
    %147 = vector.load %arg5[%c6_95, %c0_96, %c0_97] : memref<9x32x32xbf16, #tpu.memory_space<vmem>>, vector<1x32x32xbf16>
    %148 = vector.shape_cast %147 : vector<1x32x32xbf16> to vector<32x32xbf16>
    %149 = vector.extract_strided_slice %103 {offsets = [0, 32], sizes = [32, 256], strides = [1, 1]} : vector<32x290xf32> to vector<32x256xf32>
    %cst_98 = arith.constant dense<0.000000e+00> : vector<32x256xf32>
    %150 = tpu.matmul %148, %149, %cst_98 {dimension_numbers = #tpu.dot_dimension_numbers<[1], [0], [0], [1], [0, 0, 1, 1], [], []>} : vector<32x32xbf16>, vector<32x256xf32>, vector<32x256xf32> -> vector<32x256xf32>
    %cst_99 = arith.constant 0.000000e+00 : f32
    %151 = vector.broadcast %cst_99 : f32 to vector<32x256xf32>
    %152 = arith.select %21, %150, %151 : vector<32x256xi1>, vector<32x256xf32>
    %153 = arith.addf %146, %152 : vector<32x256xf32>
    %c7_100 = arith.constant 7 : index
    %c0_101 = arith.constant 0 : index
    %c0_102 = arith.constant 0 : index
    %154 = vector.load %arg5[%c7_100, %c0_101, %c0_102] : memref<9x32x32xbf16, #tpu.memory_space<vmem>>, vector<1x32x32xbf16>
    %155 = vector.shape_cast %154 : vector<1x32x32xbf16> to vector<32x32xbf16>
    %156 = vector.extract_strided_slice %103 {offsets = [0, 33], sizes = [32, 256], strides = [1, 1]} : vector<32x290xf32> to vector<32x256xf32>
    %cst_103 = arith.constant dense<0.000000e+00> : vector<32x256xf32>
    %157 = tpu.matmul %155, %156, %cst_103 {dimension_numbers = #tpu.dot_dimension_numbers<[1], [0], [0], [1], [0, 0, 1, 1], [], []>} : vector<32x32xbf16>, vector<32x256xf32>, vector<32x256xf32> -> vector<32x256xf32>
    %158 = arith.addf %153, %157 : vector<32x256xf32>
    %c8_104 = arith.constant 8 : index
    %c0_105 = arith.constant 0 : index
    %c0_106 = arith.constant 0 : index
    %159 = vector.load %arg5[%c8_104, %c0_105, %c0_106] : memref<9x32x32xbf16, #tpu.memory_space<vmem>>, vector<1x32x32xbf16>
    %160 = vector.shape_cast %159 : vector<1x32x32xbf16> to vector<32x32xbf16>
    %161 = vector.extract_strided_slice %103 {offsets = [0, 34], sizes = [32, 256], strides = [1, 1]} : vector<32x290xf32> to vector<32x256xf32>
    %cst_107 = arith.constant dense<0.000000e+00> : vector<32x256xf32>
    %162 = tpu.matmul %160, %161, %cst_107 {dimension_numbers = #tpu.dot_dimension_numbers<[1], [0], [0], [1], [0, 0, 1, 1], [], []>} : vector<32x32xbf16>, vector<32x256xf32>, vector<32x256xf32> -> vector<32x256xf32>
    %cst_108 = arith.constant 0.000000e+00 : f32
    %163 = vector.broadcast %cst_108 : f32 to vector<32x256xf32>
    %164 = arith.select %23, %162, %163 : vector<32x256xi1>, vector<32x256xf32>
    %165 = arith.addf %158, %164 : vector<32x256xf32>
    %166 = vector.broadcast %31 : vector<32x1xf32> to vector<32x256xf32>
    %167 = arith.addf %165, %166 : vector<32x256xf32>
    %168 = arith.mulf %107, %167 : vector<32x256xf32>
    %169 = arith.extf %2 : vector<32x256xbf16> to vector<32x256xf32>
    %170 = arith.addf %168, %169 : vector<32x256xf32>
    %cst_109 = arith.constant 0.000000e+00 : f32
    %171 = vector.broadcast %cst_109 : f32 to vector<32x256xf32>
    %172 = arith.maximumf %170, %171 : vector<32x256xf32>
    %c0_110 = arith.constant 0 : index
    %c0_111 = arith.constant 0 : index
    %c0_112 = arith.constant 0 : index
    %173 = vector.load %arg7[%c0_110, %c0_111, %c0_112] : memref<1x32x256xf32, #tpu.memory_space<vmem>>, vector<1x32x256xf32>
    %174 = vector.shape_cast %173 : vector<1x32x256xf32> to vector<32x256xf32>
    %175 = vector.shape_cast %172 : vector<32x256xf32> to vector<1x32x256xf32>
    tpu.vector_store %arg7[%c0_110, %c0_111, %c0_112], %175 {strides = array<i32>} : memref<1x32x256xf32, #tpu.memory_space<vmem>>, vector<1x32x256xf32>,
    return
  }
  func.func @transform_0(%arg0: i32) -> (i32, i32, i32) {
    %c0_i32 = arith.constant 0 : i32
    %c0_i32_0 = arith.constant 0 : i32
    %c0_i32_1 = arith.constant 0 : i32
    return %arg0, %c0_i32, %c0_i32_0 : i32, i32, i32
  }
  func.func @transform_1(%arg0: i32) -> (i32, i32) {
    %c0_i32 = arith.constant 0 : i32
    %c0_i32_0 = arith.constant 0 : i32
    %c0_i32_1 = arith.constant 0 : i32
    return %c0_i32, %c0_i32_0 : i32, i32
  }
  func.func @transform_2(%arg0: i32) -> (i32, i32, i32) {
    %c0_i32 = arith.constant 0 : i32
    %c0_i32_0 = arith.constant 0 : i32
    %c0_i32_1 = arith.constant 0 : i32
    %c0_i32_2 = arith.constant 0 : i32
    return %c0_i32, %c0_i32_0, %c0_i32_1 : i32, i32, i32
  }
  func.func @transform_3(%arg0: i32) -> (i32, i32) {
    %c0_i32 = arith.constant 0 : i32
    %c0_i32_0 = arith.constant 0 : i32
    %c0_i32_1 = arith.constant 0 : i32
    return %c0_i32, %c0_i32_0 : i32, i32
  }
  func.func @transform_4(%arg0: i32) -> (i32, i32, i32) {
    %c0_i32 = arith.constant 0 : i32
    %c0_i32_0 = arith.constant 0 : i32
    %c0_i32_1 = arith.constant 0 : i32
    %c0_i32_2 = arith.constant 0 : i32
    return %c0_i32, %c0_i32_0, %c0_i32_1 : i32, i32, i32
  }
  func.func @transform_5(%arg0: i32) -> (i32, i32, i32) {
    %c0_i32 = arith.constant 0 : i32
    %c0_i32_0 = arith.constant 0 : i32
    %c0_i32_1 = arith.constant 0 : i32
    %c0_i32_2 = arith.constant 0 : i32
    return %c0_i32, %c0_i32_0, %c0_i32_1 : i32, i32, i32
  }
  func.func @transform_6(%arg0: i32) -> (i32, i32, i32) {
    %c0_i32 = arith.constant 0 : i32
    %c0_i32_0 = arith.constant 0 : i32
    %c0_i32_1 = arith.constant 0 : i32
    return %arg0, %c0_i32, %c0_i32_0 : i32, i32, i32
  }
}

</mosaic_0001>

<bundles_post_ra>
// kernel: forward.1
= control target key start
LH: loop header
LB: loop body
LE: loop exit
PB: predicated region body
PF: predicated region fallthrough
CT: control target
= control target key end

     0   :  { %s3993_s21 = smov 0   ;;  %s5011_s0 = inlined_call_operand.vmem [shape: bf16[8,32,290], index: 0, kind: input, shape index: {}]   ;;  %s5012_s1 = inlined_call_operand.vmem [shape: bf16[32,32], index: 1, kind: input, shape index: {}]   ;;  %s5013_s2 = inlined_call_operand.vmem [shape: bf16[9,32,32], index: 2, kind: input, shape index: {}]   ;;  %s5014_s3 = inlined_call_operand.vmem [shape: bf16[32,32], index: 3, kind: input, shape index: {}]   ;;  %s5015_s4 = inlined_call_operand.vmem [shape: bf16[9,32,32], index: 4, kind: input, shape index: {}]   ;;  %s5016_s5 = inlined_call_operand.vmem [shape: f32[4,32,1], index: 5, kind: input, shape index: {}]   ;;  %s5017_s6 = inlined_call_operand.vmem [shape: f32[8,32,256], index: 6, kind: output, shape index: {}]  }
   0x1 LB: > { %s3228_s22 = sadd.s32 4294967295, %s3945_s21   ;;  %p3232_p0 = scmp.ge.s32.totalorder %s3945_s21, 1  ;;  %s3945_s21 = sphi %s3993_s21, %s16_s21  }
   0x2   : > { %p212_p1 = scmp.lt.s32.totalorder %s3945_s21, 9 }
   0x4   : > { %p213_p2 = pnand %p3232_p0, %p212_p1 }
   0x5   : > { %p242_p3 = scmp.lt.s32.totalorder (!%p213_p2), %s3228_s22, 7  ;;  %s3947_s27 = smov (!%p213_p2), 111   ;;  %v3948_v12 = vmov (!%p213_p2), 0   ;;  %v3892_v15 = vld [vmem:[%s5013_s2] sm:$0xff] (!%p213_p2)   ;;  %vm392_vm0 = vcmask (!%p213_p2), 261120   ;;  %v3893_v16 = vld [vmem:[%s5013_s2 + $0x8] sm:$0xff] (!%p213_p2)  }
   0x6   : > { %216 = sbr.rel (%p213_p2) target bundleno = 1028 (0x404), region = 44  ;;  %431 = vmatprep.mubr.bf16.mxu0 (!%p213_p2), %v3948_v12  ;;  %516 = vmatprep.mubr.bf16.mxu1 (!%p213_p2), %v3948_v12  ;;  %s3949_s30 = smov (!%p213_p2), 127   ;;  %v3236_v17 = vld [vmem:[%s5016_s5 + $0x20] sm:$0xff] (!%p213_p2)  ;;  %v3237_v18 = vld [vmem:[%s5016_s5 + $0x28] sm:$0xff] (!%p213_p2)  ;;  %v3239_v19 = vld [vmem:[%s5016_s5 + $0x38] sm:$0xff] (!%p213_p2)  ;;  %vm383_vm1 = vcmask (!%p213_p2), 908288  }
   0x7   : > { %3613 = vset.pattern.permute.xlu0 (!%p213_p2), %v3948_v12  ;;  %3614 = vset.pattern.permute.xlu1 (!%p213_p2), %v3948_v12  ;;  %s3950_s9 = smov (!%p213_p2), 126   ;;  %s3951_s10 = smov (!%p213_p2), 112   ;;  %v3238_v20 = vld [vmem:[%s5016_s5 + $0x30] sm:$0xff] (!%p213_p2)  ;;  %vm580_vm2 = vcmask (!%p213_p2), 1039360   ;;  %v3891_v31 = vld [vmem:[%s5012_s1] sm:$0xff] (!%p213_p2)   ;;  %vm683_vm3 = vcmask (!%p213_p2), 1031168  }
   0x8   : > { %s3952_s11 = smov (!%p213_p2), 110   ;;  %s3953_s12 = smov (!%p213_p2), 96   ;;  %v3894_v38 = vld [vmem:[%s5012_s1 + $0x8] sm:$0xff] (!%p213_p2)   ;;  %v3896_v49 = vld [vmem:[%s5013_s2 + $0x10] sm:$0xff] (!%p213_p2)   ;;  %v3895_v54 = vld [vmem:[%s5013_s2 + $0x20] sm:$0xff] (!%p213_p2)   ;;  %vm794_vm4 = vcmask (!%p213_p2), 916480  }
   0x9   : > { %s3954_s13 = smov (!%p213_p2), 95   ;;  %s3955_s14 = smov (!%p213_p2), 94   ;;  %v3898_v58 = vld [vmem:[%s5013_s2 + $0x18] sm:$0xff] (!%p213_p2)   ;;  %vm987_vm5 = vcmask (!%p213_p2), 900096   ;;  %v3897_v62 = vld [vmem:[%s5013_s2 + $0x28] sm:$0xff] (!%p213_p2)   ;;  %vm1098_vm6 = vcmask (!%p213_p2), 785408  }
   0xa   : > { %vm1209_vm7 = vcmask (!%p213_p2), 777216   ;;  %vm1312_vm8 = vcmask (!%p213_p2), 769024   ;;  %vm1434_vm13 = vcmask (!%p213_p2), 277504   ;;  %s3957_s20 = smov (!%p213_p2), 17   ;;  %vm1486_vm14 = vcmask (!%p213_p2), 1047688  }
   0xb   : > { %vm1469_vm15 = vcmask (!%p213_p2), 138240  }
   0xd   : > { %s5027_s22 = smov (!%p242_p3, %s3228_s22), 7 }
   0xe   : > { %s3593_s23 = smul.u32 48, %s5027_s22 }
  0x10   : > { %s4007_s26 = scalar_lea.vmem %s5011_s0, %s3593_s23 }
  0x11   : > { %v253_v0 = vld [vmem:[%s4007_s26] sm:$0xff]  ;;  %v255_v1 = vld [vmem:[%s4007_s26 + $0xc] sm:$0xff]  ;;  %v254_v2 = vld [vmem:[%s4007_s26 + $0x8] sm:$0xf] }
  0x12   : > { %v4012_v3 = vcombine.high %v253_v0, %v255_v1  ;;  %v4014_v4 = vcombine.low %v253_v0, %v255_v1  ;;  %v256_v5 = vld [vmem:[%s4007_s26 + $0x14] sm:$0xf]  ;;  %v257_v6 = vld [vmem:[%s4007_s26 + $0x18] sm:$0xff]  ;;  %v259_v7 = vld [vmem:[%s4007_s26 + $0x24] sm:$0xff] }
  0x13   : > { %v258_v8 = vld [vmem:[%s4007_s26 + $0x20] sm:$0xf]  ;;  %v260_v9 = vld [vmem:[%s4007_s26 + $0x2c] sm:$0xf]  ;;  %v4025_v10 = vcombine.low %v254_v2, %v256_v5  ;;  %v4027_v11 = vcombine.high %v257_v6, %v259_v7  ;;  %v3253_v14 = vcombine.low %v257_v6, %v259_v7 }
  0x14   : > { %373 = vrot.lane.b32.xlu0 %v4012_v3, %s3947_s27  ;;  %371 = vrot.lane.b32.xlu1 %v4014_v4, %s3947_s27  ;;  %v3255_v13 = vcombine.low %v258_v8, %v260_v9  ;;  %v3899_v9 = vld [vmem:[%s5013_s2 + $0x30] sm:$0xff]  }
  0x15   : > { %484 = vmatprep.subr.bf16.mxu1 %v4012_v3 }
  0x16   : > { %485 = vmatpush1.bf16.msra.mxu1 %v4014_v4 }
  0x17   : > { %486 = vmatprep.subr.bf16.mxu1 %v4027_v11 }
  0x18   : > { %375 = vrot.lane.b32.xlu0 %v4025_v10, %s3947_s27  ;;  %379 = vrot.lane.b32.xlu1 %v4027_v11, %s3947_s27 }
  0x1a   : > { %487 = vmatpush1.bf16.msra.mxu1 %v3253_v14 }
  0x1c   : > { %381 = vrot.lane.b32.xlu0 %v3255_v13, %s3947_s27  ;;  %377 = vrot.lane.b32.xlu1 %v3253_v14, %s3947_s27 }
  0x1d   : > { %3260 = vmatmul.mubr.msk.bf16.vlgmr.msra.gmra.mrb[0].mxu1 %vm392_vm0, %v3892_v15  ;;  %v3900_v15 = vld [vmem:[%s5013_s2 + $0x50] sm:$0xff]  }
  0x1e   : > { %526 = vmatprep.mubr.bf16.mxu1 %v3948_v12 }
  0x20   : > { %570 = vrot.lane.b32.xlu0 %v4012_v3, %s3949_s30  ;;  %572 = vrot.lane.b32.xlu1 %v4025_v10, %s3949_s30 }
  0x24   : > { %568 = vrot.lane.b32.xlu0 %v4014_v4, %s3949_s30  ;;  %673 = vrot.lane.b32.xlu1 %v4012_v3, %s3950_s9 }
  0x25   : > { %3261 = vmatmul.mubr.msk.bf16.gmra.mrb[4].mxu1 %vm392_vm0, %v3893_v16 }
  0x26   : > { %730 = vmatprep.mubr.bf16.mxu1 %v3948_v12 }
  0x28   : > { %675 = vrot.lane.b32.xlu0 %v4025_v10, %s3950_s9  ;;  %671 = vrot.lane.b32.xlu1 %v4014_v4, %s3950_s9 }
  0x2c   : > { %576 = vrot.lane.b32.xlu0 %v4027_v11, %s3949_s30  ;;  %578 = vrot.lane.b32.xlu1 %v3255_v13, %s3949_s30 }
  0x30   : > { %574 = vrot.lane.b32.xlu0 %v3253_v14, %s3949_s30  ;;  %679 = vrot.lane.b32.xlu1 %v4027_v11, %s3950_s9 }
  0x34   : > { %681 = vrot.lane.b32.xlu0 %v3255_v13, %s3950_s9  ;;  %677 = vrot.lane.b32.xlu1 %v3253_v14, %s3950_s9 }
  0x38   : > { %784 = vrot.lane.b32.xlu0 %v4012_v3, %s3951_s10  ;;  %786 = vrot.lane.b32.xlu1 %v4025_v10, %s3951_s10 }
  0x3c   : > { %782 = vrot.lane.b32.xlu0 %v4014_v4, %s3951_s10  ;;  %977 = vrot.lane.b32.xlu1 %v4012_v3, %s3952_s11 }
  0x40   : > { %979 = vrot.lane.b32.xlu0 %v4025_v10, %s3952_s11  ;;  %975 = vrot.lane.b32.xlu1 %v4014_v4, %s3952_s11 }
  0x44   : > { %790 = vrot.lane.b32.xlu0 %v4027_v11, %s3951_s10  ;;  %792 = vrot.lane.b32.xlu1 %v3255_v13, %s3951_s10 }
  0x48   : > { %788 = vrot.lane.b32.xlu0 %v3253_v14, %s3951_s10  ;;  %983 = vrot.lane.b32.xlu1 %v4027_v11, %s3952_s11 }
  0x4c   : > { %985 = vrot.lane.b32.xlu0 %v3255_v13, %s3952_s11  ;;  %981 = vrot.lane.b32.xlu1 %v3253_v14, %s3952_s11 }
  0x50   : > { %1088 = vrot.lane.b32.xlu0 %v4012_v3, %s3953_s12  ;;  %1090 = vrot.lane.b32.xlu1 %v4025_v10, %s3953_s12 }
  0x54   : > { %1086 = vrot.lane.b32.xlu0 %v4014_v4, %s3953_s12  ;;  %1094 = vrot.lane.b32.xlu1 %v4027_v11, %s3953_s12 }
  0x58   : > { %1096 = vrot.lane.b32.xlu0 %v3255_v13, %s3953_s12  ;;  %1092 = vrot.lane.b32.xlu1 %v3253_v14, %s3953_s12 }
  0x5c   : > { %1199 = vrot.lane.b32.xlu0 %v4012_v3, %s3954_s13  ;;  %1201 = vrot.lane.b32.xlu1 %v4025_v10, %s3954_s13 }
  0x60   : > { %1197 = vrot.lane.b32.xlu0 %v4014_v4, %s3954_s13  ;;  %1302 = vrot.lane.b32.xlu1 %v4012_v3, %s3955_s14 }
  0x64   : > { %1304 = vrot.lane.b32.xlu0 %v4025_v10, %s3955_s14  ;;  %1300 = vrot.lane.b32.xlu1 %v4014_v4, %s3955_s14 }
  0x68   : > { %1205 = vrot.lane.b32.xlu0 %v4027_v11, %s3954_s13  ;;  %1207 = vrot.lane.b32.xlu1 %v3255_v13, %s3954_s13 }
  0x6c   : > { %1203 = vrot.lane.b32.xlu0 %v3253_v14, %s3954_s13  ;;  %1308 = vrot.lane.b32.xlu1 %v4027_v11, %s3955_s14 }
  0x70   : > { %1310 = vrot.lane.b32.xlu0 %v3255_v13, %s3955_s14  ;;  %1306 = vrot.lane.b32.xlu1 %v3253_v14, %s3955_s14 }
  0x74   : > { %1398 = vperm.xlu0 %3613, %v3236_v17   ;;  %1403 = vperm.xlu1 %3614, %v3237_v18  }
  0x78   : > { %1413 = vperm.xlu0 %3613, %v3239_v19   ;;  %1408 = vperm.xlu1 %3614, %v3238_v20   ;;  %v3901_v19 = vld [vmem:[%s5013_s2 + $0x38] sm:$0xff]  }
  0x86   : > { %v374_v21 = vpop.permute.xlu0 %373  ;;  %v372_v22 = vpop.permute.xlu1 %371 }
  0x87   : > { %v4139_v26 = vsel %vm383_vm1, %v372_v22, %v374_v21 }
  0x8a   : > { %v376_v23 = vpop.permute.xlu0 %375  ;;  %v380_v24 = vpop.permute.xlu1 %379 }
  0x8b   : > { %v4135_v25 = vsel %vm383_vm1, %v374_v21, %v376_v23  ;;  %v3902_v23 = vld [vmem:[%s5013_s2 + $0x58] sm:$0xff]  }
  0x8c   : > { %399 = vmatprep.subr.bf16.mxu0 %v4135_v25 }
  0x8d   : > { %400 = vmatpush1.bf16.msra.mxu0 %v4139_v26 }
  0x8e   : > { %v382_v27 = vpop.permute.xlu0 %381  ;;  %v378_v28 = vpop.permute.xlu1 %377 }
  0x8f   : > { %v4143_v29 = vsel %vm383_vm1, %v380_v24, %v382_v27  ;;  %v4146_v30 = vsel %vm383_vm1, %v378_v28, %v380_v24  ;;  %v3903_v28 = vld [vmem:[%s5013_s2 + $0x40] sm:$0xff]  }
  0x90   : > { %401 = vmatprep.subr.bf16.mxu0 %v4143_v29 }
  0x91   : > { %402 = vmatpush1.bf16.msra.mxu0 %v4146_v30 }
  0x92   : > { %v571_v32 = vpop.permute.xlu0 %570  ;;  %v573_v33 = vpop.permute.xlu1 %572 }
  0x93   : > { %v582_v34 = vsel %vm580_vm2, %v571_v32, %v573_v33 }
  0x94   : > { %595 = vmatprep.subr.bf16.mxu0 %v582_v34  ;;  %3256 = vmatmul.mubr.msk.bf16.vlgmr.msra.gmra.mrb[0].mxu0 %vm392_vm0, %v3891_v31 }
  0x95   : > { %441 = vmatprep.mubr.bf16.mxu0 %v3948_v12 }
  0x96   : > { %v569_v35 = vpop.permute.xlu0 %568  ;;  %v674_v36 = vpop.permute.xlu1 %673 }
  0x97   : > { %v581_v37 = vsel %vm580_vm2, %v569_v35, %v571_v32  ;;  %v3904_v32 = vld [vmem:[%s5013_s2 + $0x60] sm:$0xff]  }
  0x98   : > { %596 = vmatpush1.bf16.msra.mxu0 %v581_v37 }
  0x9a   : > { %v676_v39 = vpop.permute.xlu0 %675  ;;  %v672_v40 = vpop.permute.xlu1 %671 }
  0x9b   : > { %v684_v41 = vsel %vm683_vm3, %v672_v40, %v674_v36  ;;  %v685_v42 = vsel %vm683_vm3, %v674_v36, %v676_v39  ;;  %v3905_v36 = vld [vmem:[%s5013_s2 + $0x48] sm:$0xff]  }
  0x9c   : > { %698 = vmatprep.subr.bf16.mxu1 %v685_v42  ;;  %3257 = vmatmul.mubr.msk.bf16.gmra.mrb[4].mxu0 %vm392_vm0, %v3894_v38 }
  0x9d   : > { %699 = vmatpush1.bf16.msra.mxu1 %v684_v41  ;;  %627 = vmatprep.mubr.bf16.mxu0 %v3948_v12  ;;  %v3906_v41 = vld [vmem:[%s5013_s2 + $0x68] sm:$0xff]  }
  0x9e   : > { %v577_v43 = vpop.permute.xlu0 %576  ;;  %v579_v44 = vpop.permute.xlu1 %578 }
  0x9f   : > { %v584_v45 = vsel %vm580_vm2, %v577_v43, %v579_v44 }
  0xa0   : > { %597 = vmatprep.subr.bf16.mxu0 %v584_v45 }
  0xa2   : > { %v575_v46 = vpop.permute.xlu0 %574  ;;  %v680_v47 = vpop.permute.xlu1 %679 }
  0xa3   : > { %v583_v48 = vsel %vm580_vm2, %v575_v46, %v577_v43 }
  0xa4   : > { %598 = vmatpush1.bf16.msra.mxu0 %v583_v48  ;;  %v3907_v48 = vld [vmem:[%s5013_s2 + $0x70] sm:$0xff]  }
  0xa6   : > { %v682_v50 = vpop.permute.xlu0 %681  ;;  %v678_v51 = vpop.permute.xlu1 %677 }
  0xa7   : > { %v686_v52 = vsel %vm683_vm3, %v678_v51, %v680_v47  ;;  %v687_v53 = vsel %vm683_vm3, %v680_v47, %v682_v50  ;;  %3268 = vmatmul.mubr.msk.bf16.vlgmr.msra.gmra.mrb[8].mxu0 %vm392_vm0, %v3896_v49 }
  0xa8   : > { %700 = vmatprep.subr.bf16.mxu1 %v687_v53  ;;  %637 = vmatprep.mubr.bf16.mxu0 %v3948_v12  ;;  %v3908_v53 = vld [vmem:[%s5013_s2 + $0x80] sm:$0xff]  }
  0xa9   : > { %701 = vmatpush1.bf16.msra.mxu1 %v686_v52 }
  0xaa   : > { %v785_v55 = vpop.permute.xlu0 %784  ;;  %v787_v56 = vpop.permute.xlu1 %786 }
  0xab   : > { %v796_v57 = vsel %vm794_vm4, %v785_v55, %v787_v56 }
  0xac   : > { %3276 = vmatmul.mubr.msk.bf16.vlgmr.msra.gmra.mrb[8].mxu1 %vm392_vm0, %v3895_v54  ;;  %809 = vmatprep.subr.bf16.mxu0 %v796_v57  ;;  %v3909_v54 = vld [vmem:[%s5013_s2 + $0x78] sm:$0xff]  }
  0xad   : > { %740 = vmatprep.mubr.bf16.mxu1 %v3948_v12 }
  0xae   : > { %v783_v59 = vpop.permute.xlu0 %782  ;;  %v978_v60 = vpop.permute.xlu1 %977 }
  0xaf   : > { %v795_v61 = vsel %vm794_vm4, %v783_v59, %v785_v55  ;;  %3269 = vmatmul.mubr.msk.bf16.gmra.mrb[12].mxu0 %vm392_vm0, %v3898_v58  ;;  %v3910_v55 = vld [vmem:[%s5013_s2 + $0x88] sm:$0xff]  }
  0xb0   : > { %810 = vmatpush1.bf16.msra.mxu0 %v795_v61  ;;  %841 = vmatprep.mubr.bf16.mxu0 %v3948_v12 }
  0xb2   : > { %v980_v63 = vpop.permute.xlu0 %979  ;;  %v976_v0 = vpop.permute.xlu1 %975 }
  0xb3   : > { %v988_v1 = vsel %vm987_vm5, %v976_v0, %v978_v60  ;;  %v989_v2 = vsel %vm987_vm5, %v978_v60, %v980_v63  ;;  %v3956_v0 = vmov 0.0  }
  0xb4   : > { %3277 = vmatmul.mubr.msk.bf16.gmra.mrb[12].mxu1 %vm392_vm0, %v3897_v62  ;;  %1002 = vmatprep.subr.bf16.mxu1 %v989_v2  ;;  %1432 = vst [vmem:[#allocation2] sm:$0xff] %v3956_v0  ;;  %1436 = vst [vmem:[#allocation2 + $0x18] sm:$0xff] %v3956_v0 }
  0xb5   : > { %1003 = vmatpush1.bf16.msra.mxu1 %v988_v1  ;;  %1034 = vmatprep.mubr.bf16.mxu1 %v3948_v12  ;;  %1439 = vst [vmem:[#allocation2 + $0x30] sm:$0xff] %v3956_v0  ;;  %1442 = vst [vmem:[#allocation2 + $0x48] sm:$0xff] %v3956_v0 }
  0xb6   : > { %v791_v3 = vpop.permute.xlu0 %790  ;;  %v793_v4 = vpop.permute.xlu1 %792  ;;  %1435 = vst.msk [vmem:[#allocation2 + $0x10] sm:$0xff] %vm1434_vm13, %v3956_v0  ;;  %1438 = vst.msk [vmem:[#allocation2 + $0x28] sm:$0xff] %vm1434_vm13, %v3956_v0 }
  0xb7   : > { %v798_v5 = vsel %vm794_vm4, %v791_v3, %v793_v4  ;;  %1441 = vst.msk [vmem:[#allocation2 + $0x40] sm:$0xff] %vm1434_vm13, %v3956_v0  ;;  %1444 = vst.msk [vmem:[#allocation2 + $0x58] sm:$0xff] %vm1434_vm13, %v3956_v0 }
  0xb8   : > { %811 = vmatprep.subr.bf16.mxu0 %v798_v5  ;;  %v261_v5 = vlaneseq }
  0xba   : > { %v789_v6 = vpop.permute.xlu0 %788  ;;  %v984_v7 = vpop.permute.xlu1 %983 }
  0xbb   : > { %v797_v8 = vsel %vm794_vm4, %v789_v6, %v791_v3 }
  0xbc   : > { %812 = vmatpush1.bf16.msra.mxu0 %v797_v8 }
  0xbd   : > { %899 = vmatprep.subr.bf16.mxu0 %v4135_v25 }
  0xbe   : > { %v986_v10 = vpop.permute.xlu0 %985  ;;  %v982_v11 = vpop.permute.xlu1 %981 }
  0xbf   : > { %v990_v13 = vsel %vm987_vm5, %v982_v11, %v984_v7  ;;  %3284 = vmatmul.mubr.msk.bf16.vlgmr.msra.gmra.mrb[16].mxu0 %vm392_vm0, %v3899_v9  ;;  %v991_v14 = vsel %vm987_vm5, %v984_v7, %v986_v10  ;;  %v262_v9 = vand.u32 127, %v261_v5 }
  0xc0   : > { %900 = vmatpush1.bf16.msra.mxu0 %v4139_v26  ;;  %1004 = vmatprep.subr.bf16.mxu1 %v991_v14 }
  0xc1   : > { %901 = vmatprep.subr.bf16.mxu0 %v4143_v29  ;;  %1005 = vmatpush1.bf16.msra.mxu1 %v990_v13  ;;  %v263_v11 = vadd.s32 128, %v262_v9  ;;  %v268_v13 = vand.u32 15, %v262_v9 }
  0xc2   : > { %v1089_v16 = vpop.permute.xlu0 %1088  ;;  %v1091_v17 = vpop.permute.xlu1 %1090  ;;  %851 = vmatprep.mubr.bf16.mxu0 %v3948_v12 }
  0xc3   : > { %v1100_v18 = vsel %vm1098_vm6, %v1089_v16, %v1091_v17  ;;  %v275_v14 = vand.u32 15, %v263_v11  ;;  %vm4292_vm9 = vcmp.ne.s32.totalorder %v268_v13, 0  ;;  %vm4296_vm10 = vcmp.ne.s32.totalorder %v268_v13, 15 }
  0xc4   : > { %902 = vmatpush1.bf16.msra.mxu0 %v4146_v30  ;;  %3300 = vmatmul.mubr.msk.bf16.vlgmr.msra.gmra.mrb[16].mxu1 %vm392_vm0, %v3900_v15 }
  0xc5   : > { %1113 = vmatprep.subr.bf16.mxu1 %v1100_v18  ;;  %1044 = vmatprep.mubr.bf16.mxu1 %v3948_v12  ;;  %vm4300_vm11 = vcmp.ne.s32.totalorder %v275_v14, 0  ;;  %vm4304_vm12 = vcmp.ne.s32.totalorder %v275_v14, 15 }
  0xc6   : > { %v1087_v20 = vpop.permute.xlu0 %1086  ;;  %v1095_v21 = vpop.permute.xlu1 %1094 }
  0xc7   : > { %v1099_v22 = vsel %vm1098_vm6, %v1087_v20, %v1089_v16  ;;  %3285 = vmatmul.mubr.msk.bf16.gmra.mrb[20].mxu0 %vm392_vm0, %v3901_v19 }
  0xc8   : > { %1114 = vmatpush1.bf16.msra.mxu1 %v1099_v22  ;;  %931 = vmatprep.mubr.bf16.mxu0 %v3948_v12 }
  0xca   : > { %v1097_v24 = vpop.permute.xlu0 %1096  ;;  %v1093_v25 = vpop.permute.xlu1 %1092 }
  0xcb   : > { %v1101_v26 = vsel %vm1098_vm6, %v1093_v25, %v1095_v21  ;;  %v1102_v27 = vsel %vm1098_vm6, %v1095_v21, %v1097_v24 }
  0xcc   : > { %3301 = vmatmul.mubr.msk.bf16.gmra.mrb[20].mxu1 %vm392_vm0, %v3902_v23  ;;  %1115 = vmatprep.subr.bf16.mxu1 %v1102_v27 }
  0xcd   : > { %1116 = vmatpush1.bf16.msra.mxu1 %v1101_v26  ;;  %1145 = vmatprep.mubr.bf16.mxu1 %v3948_v12 }
  0xce   : > { %v1200_v29 = vpop.permute.xlu0 %1199  ;;  %v1202_v30 = vpop.permute.xlu1 %1201 }
  0xcf   : > { %v1211_v31 = vsel %vm1209_vm7, %v1200_v29, %v1202_v30  ;;  %3292 = vmatmul.mubr.msk.bf16.vlgmr.msra.gmra.mrb[8].mxu0 %vm392_vm0, %v3903_v28 }
  0xd0   : > { %1224 = vmatprep.subr.bf16.mxu0 %v1211_v31  ;;  %941 = vmatprep.mubr.bf16.mxu0 %v3948_v12 }
  0xd2   : > { %v1198_v33 = vpop.permute.xlu0 %1197  ;;  %v1303_v34 = vpop.permute.xlu1 %1302 }
  0xd3   : > { %v1210_v35 = vsel %vm1209_vm7, %v1198_v33, %v1200_v29 }
  0xd4   : > { %3308 = vmatmul.mubr.msk.bf16.vlgmr.msra.gmra.mrb[24].mxu1 %vm392_vm0, %v3904_v32  ;;  %1225 = vmatpush1.bf16.msra.mxu0 %v1210_v35 }
  0xd5   : > { %1155 = vmatprep.mubr.bf16.mxu1 %v3948_v12 }
  0xd6   : > { %v1305_v37 = vpop.permute.xlu0 %1304  ;;  %v1301_v38 = vpop.permute.xlu1 %1300 }
  0xd7   : > { %v1313_v39 = vsel %vm1312_vm8, %v1301_v38, %v1303_v34  ;;  %v1314_v40 = vsel %vm1312_vm8, %v1303_v34, %v1305_v37  ;;  %3293 = vmatmul.mubr.msk.bf16.gmra.mrb[12].mxu0 %vm392_vm0, %v3905_v36 }
  0xd8   : > { %1327 = vmatprep.subr.bf16.mxu1 %v1314_v40  ;;  %1256 = vmatprep.mubr.bf16.mxu0 %v3948_v12 }
  0xd9   : > { %1328 = vmatpush1.bf16.msra.mxu1 %v1313_v39 }
  0xda   : > { %v1206_v42 = vpop.permute.xlu0 %1205  ;;  %v1208_v43 = vpop.permute.xlu1 %1207 }
  0xdb   : > { %v1213_v44 = vsel %vm1209_vm7, %v1206_v42, %v1208_v43 }
  0xdc   : > { %3309 = vmatmul.mubr.msk.bf16.gmra.mrb[28].mxu1 %vm392_vm0, %v3906_v41  ;;  %1226 = vmatprep.subr.bf16.mxu0 %v1213_v44 }
  0xdd   : > { %1359 = vmatprep.mubr.bf16.mxu1 %v3948_v12 }
  0xde   : > { %v1204_v45 = vpop.permute.xlu0 %1203  ;;  %v1309_v46 = vpop.permute.xlu1 %1308 }
  0xdf   : > { %v1212_v47 = vsel %vm1209_vm7, %v1204_v45, %v1206_v42 }
  0xe0   : > { %1227 = vmatpush1.bf16.msra.mxu0 %v1212_v47 }
  0xe2   : > { %v1311_v49 = vpop.permute.xlu0 %1310  ;;  %v1307_v50 = vpop.permute.xlu1 %1306 }
  0xe3   : > { %v1315_v51 = vsel %vm1312_vm8, %v1307_v50, %v1309_v46  ;;  %3316 = vmatmul.mubr.msk.bf16.vlgmr.msra.gmra.mrb[8].mxu0 %vm392_vm0, %v3907_v48  ;;  %v1316_v52 = vsel %vm1312_vm8, %v1309_v46, %v1311_v49 }
  0xe4   : > { %1329 = vmatprep.subr.bf16.mxu1 %v1316_v52  ;;  %1266 = vmatprep.mubr.bf16.mxu0 %v3948_v12 }
  0xe5   : > { %1330 = vmatpush1.bf16.msra.mxu1 %v1315_v51 }
  0xe8   : > { %3324 = vmatmul.mubr.msk.bf16.vlgmr.msra.gmra.mrb[32].mxu1 %vm392_vm0, %v3908_v53 }
  0xe9   : > { %1369 = vmatprep.mubr.bf16.mxu1 %v3948_v12 }
  0xeb   : > { %3317 = vmatmul.mubr.msk.bf16.gmra.mrb[12].mxu0 %vm392_vm0, %v3909_v54 }
  0xec   : > { %1615 = vmatprep.mubr.bf16.mxu0 %v3948_v12 }
  0xf0   : > { %3325 = vmatmul.mubr.msk.bf16.gmra.mrb[36].mxu1 %vm392_vm0, %v3910_v55  ;;  %v518_v56 = vpop.f32.mrb[0].mxu1 }
  0xf1   : > { %v520_v57 = vpop.f32.mrb[1].mxu1  ;;  %1720 = vmatprep.mubr.bf16.mxu1 %v3948_v12  ;;  %v537_v20 = vsel %vm4292_vm9, %v518_v56, 0.0 }
  0xf2   : > { %v522_v58 = vpop.f32.mrb[2].mxu1  ;;  %v538_v23 = vsel %vm4300_vm11, %v520_v57, 0.0 }
  0xf3   : > { %v524_v59 = vpop.f32.mrb[3].mxu1  ;;  %v539_v27 = vsel %vm4292_vm9, %v522_v58, 0.0 }
  0xf4   : > { %v540_v31 = vsel %vm4300_vm11, %v524_v59, 0.0 }
  0xf8   : > { %v528_v60 = vpop.f32.mrb[4].mxu1 }
  0xf9   : > { %v530_v61 = vpop.f32.mrb[5].mxu1  ;;  %v541_v36 = vsel %vm4292_vm9, %v528_v60, 0.0 }
  0xfa   : > { %v532_v62 = vpop.f32.mrb[6].mxu1  ;;  %v542_v39 = vsel %vm4300_vm11, %v530_v61, 0.0 }
  0xfb   : > { %v534_v63 = vpop.f32.mrb[7].mxu1  ;;  %v543_v43 = vsel %vm4292_vm9, %v532_v62, 0.0 }
  0xfc   : > { %v544_v47 = vsel %vm4300_vm11, %v534_v63, 0.0 }
 0x167   : > { %v4276_v1 = vpop.f32.mrb[0].mxu0 }
 0x168   : > { %v4278_v2 = vpop.f32.mrb[1].mxu0 }
 0x169   : > { %v4280_v3 = vpop.f32.mrb[2].mxu0 }
 0x16a   : > { %v4282_v4 = vpop.f32.mrb[3].mxu0 }
 0x16f   : > { %v4284_v6 = vpop.f32.mrb[4].mxu0 }
 0x170   : > { %v4286_v7 = vpop.f32.mrb[5].mxu0 }
 0x171   : > { %v4288_v8 = vpop.f32.mrb[6].mxu0 }
 0x172   : > { %v4290_v10 = vpop.f32.mrb[7].mxu0 }
 0x17f   : > { %v732_v19 = vpop.f32.mrb[8].mxu1 }
 0x180   : > { %v751_v21 = vsel %vm4296_vm10, %v732_v19, 0.0  ;;  %v734_v22 = vpop.f32.mrb[9].mxu1 }
 0x181   : > { %v3481_v24 = vadd.f32 %v751_v21, %v537_v20  ;;  %v752_v25 = vsel %vm4304_vm12, %v734_v22, 0.0  ;;  %v736_v26 = vpop.f32.mrb[10].mxu1 }
 0x182   : > { %v3486_v28 = vadd.f32 %v752_v25, %v538_v23  ;;  %v753_v29 = vsel %vm4296_vm10, %v736_v26, 0.0  ;;  %v738_v30 = vpop.f32.mrb[11].mxu1 }
 0x183   : > { %v3491_v32 = vadd.f32 %v753_v29, %v539_v27  ;;  %v754_v33 = vsel %vm4304_vm12, %v738_v30, 0.0 }
 0x184   : > { %v3496_v34 = vadd.f32 %v754_v33, %v540_v31 }
 0x187   : > { %v742_v35 = vpop.f32.mrb[12].mxu1 }
 0x188   : > { %v755_v37 = vsel %vm4296_vm10, %v742_v35, 0.0  ;;  %v744_v38 = vpop.f32.mrb[13].mxu1 }
 0x189   : > { %v3501_v40 = vadd.f32 %v755_v37, %v541_v36  ;;  %v756_v41 = vsel %vm4304_vm12, %v744_v38, 0.0  ;;  %v746_v42 = vpop.f32.mrb[14].mxu1 }
 0x18a   : > { %v3506_v44 = vadd.f32 %v756_v41, %v542_v39  ;;  %v757_v45 = vsel %vm4296_vm10, %v746_v42, 0.0  ;;  %v748_v46 = vpop.f32.mrb[15].mxu1 }
 0x18b   : > { %v3511_v48 = vadd.f32 %v757_v45, %v543_v43  ;;  %v758_v49 = vsel %vm4304_vm12, %v748_v46, 0.0 }
 0x18c   : > { %v3516_v50 = vadd.f32 %v758_v49, %v544_v47 }
 0x192   : > { %v843_v51 = vpop.f32.mrb[16].mxu0 }
 0x193   : > { %v862_v52 = vsel %vm4292_vm9, %v843_v51, 0.0  ;;  %v845_v53 = vpop.f32.mrb[17].mxu0 }
 0x194   : > { %v3482_v54 = vadd.f32 %v3481_v24, %v862_v52  ;;  %v863_v55 = vsel %vm4300_vm11, %v845_v53, 0.0  ;;  %v847_v56 = vpop.f32.mrb[18].mxu0 }
 0x195   : > { %v3487_v57 = vadd.f32 %v3486_v28, %v863_v55  ;;  %v864_v58 = vsel %vm4292_vm9, %v847_v56, 0.0  ;;  %v849_v59 = vpop.f32.mrb[19].mxu0 }
 0x196   : > { %v3492_v60 = vadd.f32 %v3491_v32, %v864_v58  ;;  %v865_v61 = vsel %vm4300_vm11, %v849_v59, 0.0 }
 0x197   : > { %v3497_v62 = vadd.f32 %v3496_v34, %v865_v61  ;;  %v1036_v63 = vpop.f32.mrb[16].mxu1 }
 0x198   : > { %v1055_v5 = vsel %vm4296_vm10, %v1036_v63, 0.0  ;;  %v1038_v9 = vpop.f32.mrb[17].mxu1 }
 0x199   : > { %v3483_v11 = vadd.f32 %v3482_v54, %v1055_v5  ;;  %v1056_v13 = vsel %vm4304_vm12, %v1038_v9, 0.0  ;;  %v1040_v14 = vpop.f32.mrb[18].mxu1 }
 0x19a   : > { %v3488_v19 = vadd.f32 %v3487_v57, %v1056_v13  ;;  %v1057_v20 = vsel %vm4296_vm10, %v1040_v14, 0.0  ;;  %v853_v21 = vpop.f32.mrb[20].mxu0  ;;  %v1042_v22 = vpop.f32.mrb[19].mxu1 }
 0x19b   : > { %v3493_v23 = vadd.f32 %v3492_v60, %v1057_v20  ;;  %v866_v24 = vsel %vm4292_vm9, %v853_v21, 0.0  ;;  %v1058_v25 = vsel %vm4304_vm12, %v1042_v22, 0.0  ;;  %v855_v26 = vpop.f32.mrb[21].mxu0 }
 0x19c   : > { %v3502_v27 = vadd.f32 %v3501_v40, %v866_v24  ;;  %v3498_v28 = vadd.f32 %v3497_v62, %v1058_v25  ;;  %v867_v29 = vsel %vm4300_vm11, %v855_v26, 0.0  ;;  %v857_v30 = vpop.f32.mrb[22].mxu0 }
 0x19d   : > { %v3507_v31 = vadd.f32 %v3506_v44, %v867_v29  ;;  %v868_v32 = vsel %vm4292_vm9, %v857_v30, 0.0  ;;  %v859_v33 = vpop.f32.mrb[23].mxu0 }
 0x19e   : > { %v3512_v34 = vadd.f32 %v3511_v48, %v868_v32  ;;  %v869_v35 = vsel %vm4300_vm11, %v859_v33, 0.0  ;;  %v1399_v32 = vpop.permute.xlu0 %1398 }
 0x19f   : > { %v3517_v36 = vadd.f32 %v3516_v50, %v869_v35  ;;  %v1046_v37 = vpop.f32.mrb[20].mxu1 }
 0x1a0   : > { %v1059_v38 = vsel %vm4296_vm10, %v1046_v37, 0.0  ;;  %v1048_v39 = vpop.f32.mrb[21].mxu1 }
 0x1a1   : > { %v3503_v40 = vadd.f32 %v3502_v27, %v1059_v38  ;;  %v1060_v41 = vsel %vm4304_vm12, %v1048_v39, 0.0  ;;  %v1050_v42 = vpop.f32.mrb[22].mxu1  ;;  %v1404_v38 = vpop.permute.xlu1 %1403 }
 0x1a2   : > { %v3508_v43 = vadd.f32 %v3507_v31, %v1060_v41  ;;  %v1061_v44 = vsel %vm4296_vm10, %v1050_v42, 0.0  ;;  %v1052_v45 = vpop.f32.mrb[23].mxu1 }
 0x1a3   : > { %v3513_v46 = vadd.f32 %v3512_v34, %v1061_v44  ;;  %v1062_v47 = vsel %vm4304_vm12, %v1052_v45, 0.0 }
 0x1a4   : > { %v3518_v48 = vadd.f32 %v3517_v36, %v1062_v47 }
 0x1a7   : > { %v1147_v49 = vpop.f32.mrb[24].mxu1 }
 0x1a8   : > { %v1166_v50 = vsel %vm4292_vm9, %v1147_v49, 0.0  ;;  %v1149_v51 = vpop.f32.mrb[25].mxu1 }
 0x1a9   : > { %v3484_v52 = vadd.f32 %v3483_v11, %v1166_v50  ;;  %v1167_v53 = vsel %vm4300_vm11, %v1149_v51, 0.0  ;;  %v1151_v54 = vpop.f32.mrb[26].mxu1 }
 0x1aa   : > { %v3489_v55 = vadd.f32 %v3488_v19, %v1167_v53  ;;  %v1168_v56 = vsel %vm4292_vm9, %v1151_v54, 0.0  ;;  %v1153_v57 = vpop.f32.mrb[27].mxu1 }
 0x1ab   : > { %v3494_v58 = vadd.f32 %v3493_v23, %v1168_v56  ;;  %v1169_v59 = vsel %vm4300_vm11, %v1153_v57, 0.0 }
 0x1ac   : > { %v3499_v60 = vadd.f32 %v3498_v28, %v1169_v59 }
 0x1af   : > { %v1157_v61 = vpop.f32.mrb[28].mxu1 }
 0x1b0   : > { %v1170_v62 = vsel %vm4292_vm9, %v1157_v61, 0.0  ;;  %v1159_v63 = vpop.f32.mrb[29].mxu1 }
 0x1b1   : > { %v3504_v5 = vadd.f32 %v3503_v40, %v1170_v62  ;;  %v1171_v9 = vsel %vm4300_vm11, %v1159_v63, 0.0  ;;  %v1161_v11 = vpop.f32.mrb[30].mxu1 }
 0x1b2   : > { %v3509_v13 = vadd.f32 %v3508_v43, %v1171_v9  ;;  %v1172_v14 = vsel %vm4292_vm9, %v1161_v11, 0.0  ;;  %v1163_v19 = vpop.f32.mrb[31].mxu1  ;;  %v1409_v11 = vpop.permute.xlu1 %1408 }
 0x1b3   : > { %v3514_v20 = vadd.f32 %v3513_v46, %v1172_v14  ;;  %v1173_v21 = vsel %vm4300_vm11, %v1163_v19, 0.0 }
 0x1b4   : > { %v3519_v22 = vadd.f32 %v3518_v48, %v1173_v21 }
 0x1b6   : > { %v1258_v23 = vpop.f32.mrb[8].mxu0 }
 0x1b7   : > { %v3485_v24 = vadd.f32 %v3484_v52, %v1258_v23  ;;  %v1260_v25 = vpop.f32.mrb[9].mxu0  ;;  %v1414_v23 = vpop.permute.xlu0 %1413 }
 0x1b8   : > { %v3490_v26 = vadd.f32 %v3489_v55, %v1260_v25  ;;  %v1262_v27 = vpop.f32.mrb[10].mxu0 }
 0x1b9   : > { %v3495_v28 = vadd.f32 %v3494_v58, %v1262_v27  ;;  %v1264_v29 = vpop.f32.mrb[11].mxu0 }
 0x1ba   : > { %v3500_v30 = vadd.f32 %v3499_v60, %v1264_v29 }
 0x1bb   : > { %v1361_v31 = vpop.f32.mrb[32].mxu1 }
 0x1bc   : > { %v1380_v33 = vsel %vm4296_vm10, %v1361_v31, 0.0  ;;  %v1363_v34 = vpop.f32.mrb[33].mxu1 }
 0x1bd   : > { %v1388_v35 = vadd.f32 %v3485_v24, %v1380_v33  ;;  %v1381_v36 = vsel %vm4304_vm12, %v1363_v34, 0.0  ;;  %v1365_v37 = vpop.f32.mrb[34].mxu1  ;;  %v293_v33 = vld [vmem:[%s5016_s5 + $0x8] sm:$0xff]  ;;  %v294_v34 = vld [vmem:[%s5016_s5 + $0x10] sm:$0xff] }
 0x1be   : > { %v1389_v39 = vadd.f32 %v3490_v26, %v1381_v36  ;;  %v1382_v0 = vsel %vm4296_vm10, %v1365_v37, 0.0  ;;  %v1268_v40 = vpop.f32.mrb[12].mxu0  ;;  %v1367_v41 = vpop.f32.mrb[35].mxu1 }
 0x1bf   : > { %v1416_v42 = vadd.f32 %v1399_v32, %v1388_v35  ;;  %v1390_v43 = vadd.f32 %v3495_v28, %v1382_v0  ;;  %v3505_v44 = vadd.f32 %v3504_v5, %v1268_v40  ;;  %v1383_v45 = vsel %vm4304_vm12, %v1367_v41, 0.0  ;;  %v1270_v46 = vpop.f32.mrb[13].mxu0  ;;  %v295_v35 = vld [vmem:[%s5016_s5 + $0x18] sm:$0xff] }
 0x1c0   : > { %v1417_v47 = vadd.f32 %v1399_v32, %v1389_v39  ;;  %v1391_v48 = vadd.f32 %v3500_v30, %v1383_v45  ;;  %v3510_v49 = vadd.f32 %v3509_v13, %v1270_v46  ;;  %v1272_v50 = vpop.f32.mrb[14].mxu0  ;;  %v292_v32 = vld [vmem:[%s5016_s5] sm:$0xff] }
 0x1c1   : > { %v3515_v51 = vadd.f32 %v3514_v20, %v1272_v50  ;;  %v1418_v52 = vadd.f32 %v1404_v38, %v1390_v43  ;;  %v1274_v53 = vpop.f32.mrb[15].mxu0  ;;  %v1424_v54 = vmax.f32 %v1416_v42, 0.0 }
 0x1c2   : > { %v1419_v55 = vadd.f32 %v1404_v38, %v1391_v48  ;;  %v3520_v56 = vadd.f32 %v3519_v22, %v1274_v53  ;;  %v1425_v57 = vmax.f32 %v1417_v47, 0.0 }
 0x1c3   : > { %1453 = vrot.lane.b32.xlu1 %v1424_v54, %s3957_s20  ;;  %v1371_v58 = vpop.f32.mrb[36].mxu1  ;;  %v1426_v61 = vmax.f32 %v1418_v52, 0.0 }
 0x1c4   : > { %v1384_v59 = vsel %vm4296_vm10, %v1371_v58, 0.0  ;;  %1455 = vrot.lane.b32.xlu0 %v1425_v57, %s3957_s20  ;;  %v1373_v60 = vpop.f32.mrb[37].mxu1  ;;  %v1427_v9 = vmax.f32 %v1419_v55, 0.0 }
 0x1c5   : > { %v1392_v62 = vadd.f32 %v3505_v44, %v1384_v59  ;;  %v1385_v63 = vsel %vm4304_vm12, %v1373_v60, 0.0  ;;  %v1375_v5 = vpop.f32.mrb[38].mxu1  ;;  %v3913_v60 = vld [vmem:[%s5015_s4] sm:$0xff]  }
 0x1c6   : > { %v1393_v13 = vadd.f32 %v3510_v49, %v1385_v63  ;;  %v1386_v14 = vsel %vm4296_vm10, %v1375_v5, 0.0  ;;  %v1377_v19 = vpop.f32.mrb[39].mxu1 }
 0x1c7   : > { %v1420_v20 = vadd.f32 %v1409_v11, %v1392_v62  ;;  %v1394_v21 = vadd.f32 %v3515_v51, %v1386_v14  ;;  %v1387_v22 = vsel %vm4304_vm12, %v1377_v19, 0.0  ;;  %1457 = vrot.lane.b32.xlu1 %v1426_v61, %s3957_s20 }
 0x1c8   : > { %v1421_v24 = vadd.f32 %v1409_v11, %v1393_v13  ;;  %v1395_v25 = vadd.f32 %v3520_v56, %v1387_v22  ;;  %1459 = vrot.lane.b32.xlu0 %v1427_v9, %s3957_s20 }
 0x1c9   : > { %v1428_v26 = vmax.f32 %v1420_v20, 0.0  ;;  %v1422_v27 = vadd.f32 %v1414_v23, %v1394_v21 }
 0x1ca   : > { %v1423_v28 = vadd.f32 %v1414_v23, %v1395_v25  ;;  %v1429_v29 = vmax.f32 %v1421_v24, 0.0 }
 0x1cb   : > { %1461 = vrot.lane.b32.xlu1 %v1428_v26, %s3957_s20  ;;  %v1430_v30 = vmax.f32 %v1422_v27, 0.0 }
 0x1cc   : > { %1463 = vrot.lane.b32.xlu0 %v1429_v29, %s3957_s20  ;;  %v1431_v31 = vmax.f32 %v1423_v28, 0.0 }
 0x1cf   : > { %1465 = vrot.lane.b32.xlu1 %v1430_v30, %s3957_s20 }
 0x1d0   : > { %1467 = vrot.lane.b32.xlu0 %v1431_v31, %s3957_s20 }
 0x1d3   : > { %317 = vperm.xlu1 %3614, %v292_v32  }
 0x1d4   : > { %322 = vperm.xlu0 %3613, %v293_v33   ;;  %v3912_v33 = vld [vmem:[%s5014_s3 + $0x8] sm:$0xff]  }
 0x1d7   : > { %327 = vperm.xlu1 %3614, %v294_v34  }
 0x1d8   : > { %332 = vperm.xlu0 %3613, %v295_v35   ;;  %v3240_v35 = vld [vmem:[%s5016_s5 + $0x40] sm:$0xff] }
 0x235   : > { %v1454_v36 = vpop.permute.xlu1 %1453 }
 0x236   : > { %1487 = vst.msk [vmem:[#allocation2] sm:$0xff] %vm1486_vm14, %v1454_v36  ;;  %v1456_v37 = vpop.permute.xlu0 %1455 }
 0x237   : > { %v1470_v38 = vsel %vm1469_vm15, %v1454_v36, %v1456_v37  ;;  %1489 = vst.msk [vmem:[#allocation2 + $0x10] sm:$0xff] %vm1469_vm15, %v1456_v37  ;;  %v3241_v36 = vld [vmem:[%s5016_s5 + $0x48] sm:$0xff]  ;;  %v3242_v37 = vld [vmem:[%s5016_s5 + $0x50] sm:$0xff] }
 0x239   : > { %v1458_v39 = vpop.permute.xlu1 %1457 }
 0x23a   : > { %1490 = vst.msk [vmem:[#allocation2 + $0x18] sm:$0xff] %vm1486_vm14, %v1458_v39  ;;  %v1460_v0 = vpop.permute.xlu0 %1459 }
 0x23b   : > { %v1471_v40 = vsel %vm1469_vm15, %v1458_v39, %v1460_v0  ;;  %1492 = vst.msk [vmem:[#allocation2 + $0x28] sm:$0xff] %vm1469_vm15, %v1460_v0  ;;  %v3244_v39 = vld [vmem:[%s5016_s5 + $0x60] sm:$0xff]  ;;  %v3245_v0 = vld [vmem:[%s5016_s5 + $0x68] sm:$0xff] }
 0x23c   : > { %v3409_v41 = vpack.c.bf16 %v1471_v40, %v1470_v38 }
 0x23d   : > { %v1462_v42 = vpop.permute.xlu1 %1461  ;;  %v1499_v48 = vld [vmem:[#allocation2] sm:$0xff] }
 0x23e   : > { %1493 = vst.msk [vmem:[#allocation2 + $0x30] sm:$0xff] %vm1486_vm14, %v1462_v42  ;;  %v1464_v43 = vpop.permute.xlu0 %1463  ;;  %v1501_v44 = vld [vmem:[#allocation2 + $0x10] sm:$0xff]  ;;  %3410 = vmatprep.subr.bf16.mxu1 %v3409_v41  ;;  %v3247_v41 = vld [vmem:[%s5016_s5 + $0x78] sm:$0xff] }
 0x23f   : > { %v1472_v45 = vsel %vm1469_vm15, %v1462_v42, %v1464_v43  ;;  %1495 = vst.msk [vmem:[#allocation2 + $0x40] sm:$0xff] %vm1469_vm15, %v1464_v43  ;;  %v4437_v46 = vpack.i.bf16 %v1501_v44, %v1470_v38  ;;  %v3243_v38 = vld [vmem:[%s5016_s5 + $0x58] sm:$0xff] }
 0x241   : > { %v1466_v47 = vpop.permute.xlu1 %1465  ;;  %3616 = vrot.lane.b32.xlu1 %v4437_v46, %s3949_s30  ;;  %3626 = vrot.lane.b32.xlu0 %v4437_v46, %s3950_s9  ;;  %v1502_v49 = vld [vmem:[#allocation2 + $0x18] sm:$0xff] }
 0x242   : > { %1496 = vst.msk [vmem:[#allocation2 + $0x48] sm:$0xff] %vm1486_vm14, %v1466_v47  ;;  %v1468_v50 = vpop.permute.xlu0 %1467  ;;  %v4444_v51 = vpack.i.bf16 %v1502_v49, %v1499_v48  ;;  %v3411_v52 = vpack.c.bf16 %v1502_v49, %v1499_v48  ;;  %v1504_v58 = vld [vmem:[#allocation2 + $0x28] sm:$0xff] }
 0x243   : > { %v4447_v53 = vsel %vm1469_vm15, %v1466_v47, %v1468_v50  ;;  %1498 = vst.msk [vmem:[#allocation2 + $0x58] sm:$0xff] %vm1469_vm15, %v1468_v50  ;;  %v4468_v61 = vpack.i.bf16 %v1504_v58, %v1471_v40  ;;  %v3246_v40 = vld [vmem:[%s5016_s5 + $0x70] sm:$0xff] }
 0x244   : > { %3412 = vmatpush1.bf16.msra.mxu1 %v3411_v52  ;;  %v3413_v54 = vpack.c.bf16 %v4447_v53, %v1472_v45  ;;  %v3933_v58 = vld [vmem:[%s4007_s26 + $0xc] sm:$0xff] }
 0x245   : > { %3621 = vrot.lane.b32.xlu1 %v4444_v51, %s3949_s30  ;;  %3631 = vrot.lane.b32.xlu0 %v4444_v51, %s3950_s9  ;;  %v1505_v55 = vld [vmem:[#allocation2 + $0x30] sm:$0xff] }
 0x246   : > { %3414 = vmatprep.subr.bf16.mxu1 %v3413_v54  ;;  %v1507_v14 = vld [vmem:[#allocation2 + $0x40] sm:$0xff] }
 0x249   : > { %3636 = vrot.lane.b32.xlu1 %v4437_v46, %s3951_s10  ;;  %3646 = vrot.lane.b32.xlu0 %v4437_v46, %s3952_s11  ;;  %v1508_v56 = vld [vmem:[#allocation2 + $0x48] sm:$0xff] }
 0x24a   : > { %v3415_v57 = vpack.c.bf16 %v1508_v56, %v1505_v55  ;;  %v4459_v59 = vpack.i.bf16 %v1508_v56, %v1505_v55  ;;  %v1510_v32 = vld [vmem:[#allocation2 + $0x58] sm:$0xff]  ;;  %v3932_v56 = vld [vmem:[%s4007_s26 + $0x8] sm:$0xf] }
 0x24b   : > { %v3720_v34 = vpack.i.bf16 %v1510_v32, %v4447_v53  ;;  %v3931_v53 = vld [vmem:[%s4007_s26] sm:$0xff] }
 0x24c   : > { %3416 = vmatpush1.bf16.msra.mxu1 %v3415_v57  ;;  %v3085_v54 = vunpack.c.l.bf16 %v3931_v53  ;;  %v3086_v55 = vunpack.c.h.bf16 %v3931_v53  ;;  %v3087_v57 = vunpack.c.l.bf16 %v3932_v56 }
 0x24d   : > { %3641 = vrot.lane.b32.xlu1 %v4444_v51, %s3951_s10  ;;  %3651 = vrot.lane.b32.xlu0 %v4444_v51, %s3952_s11 }
 0x24f   : > { %3332 = vmatmul.mubr.msk.bf16.vlgmr.msra.gmra.mrb[40].mxu1 %vm392_vm0, %v3913_v60 }
 0x250   : > { %1730 = vmatprep.mubr.bf16.mxu1 %v3948_v12 }
 0x251   : > { %3656 = vrot.lane.b32.xlu1 %v4437_v46, %s3947_s27  ;;  %3661 = vrot.lane.b32.xlu0 %v4468_v61, %s3949_s30 }
 0x252   : > { %v318_v62 = vpop.permute.xlu1 %317 }
 0x253   : > { %v434_v63 = vadd.f32 %v4276_v1, %v318_v62  ;;  %v436_v5 = vadd.f32 %v4278_v2, %v318_v62  ;;  %v323_v9 = vpop.permute.xlu0 %322  ;;  %v3089_v62 = vunpack.c.h.bf16 %v3933_v58 }
 0x254   : > { %v438_v11 = vadd.f32 %v4280_v3, %v323_v9  ;;  %v440_v13 = vadd.f32 %v4282_v4, %v323_v9  ;;  %v3690_v3 = vpack.i.bf16 %v1507_v14, %v1472_v45 }
 0x255   : > { %v452_v19 = vmax.f32 %v434_v63, 0.0  ;;  %v453_v20 = vmax.f32 %v436_v5, 0.0  ;;  %3666 = vrot.lane.b32.xlu1 %v4468_v61, %s3950_s9  ;;  %3671 = vrot.lane.b32.xlu0 %v4468_v61, %s3951_s10  ;;  %v3934_v63 = vld [vmem:[%s4007_s26 + $0x14] sm:$0xf] }
 0x256   : > { %v454_v21 = vmax.f32 %v438_v11, 0.0  ;;  %v455_v22 = vmax.f32 %v440_v13, 0.0  ;;  %v328_v23 = vpop.permute.xlu1 %327  ;;  %v3090_v5 = vunpack.c.l.bf16 %v3934_v63  ;;  %v3855_v13 = vpack.i.bf16 %v3086_v55, %v3085_v54 }
 0x257   : > { %v444_v1 = vadd.f32 %v4284_v6, %v328_v23  ;;  %v446_v2 = vadd.f32 %v4286_v7, %v328_v23  ;;  %v333_v24 = vpop.permute.xlu0 %332 }
 0x258   : > { %v3403_v25 = vpack.c.bf16 %v454_v21, %v452_v19  ;;  %v448_v4 = vadd.f32 %v4288_v8, %v333_v24  ;;  %v450_v26 = vadd.f32 %v4290_v10, %v333_v24  ;;  %v3401_v27 = vpack.c.bf16 %v455_v22, %v453_v20  ;;  %v3911_v8 = vld [vmem:[%s5014_s3] sm:$0xff]   ;;  %v3914_v10 = vld [vmem:[%s5015_s4 + $0x8] sm:$0xff]   ;;  %v3935_v19 = vld [vmem:[%s4007_s26 + $0x18] sm:$0xff] }
 0x259   : > { %v456_v28 = vmax.f32 %v444_v1, 0.0  ;;  %v457_v29 = vmax.f32 %v446_v2, 0.0  ;;  %3676 = vrot.lane.b32.xlu1 %v4468_v61, %s3952_s11  ;;  %3691 = vrot.lane.b32.xlu0 %v3690_v3, %s3950_s9  ;;  %v3091_v20 = vunpack.c.l.bf16 %v3935_v19  ;;  %v3092_v21 = vunpack.c.h.bf16 %v3935_v19 }
 0x25a   : > { %v458_v30 = vmax.f32 %v448_v4, 0.0  ;;  %v459_v31 = vmax.f32 %v450_v26, 0.0  ;;  %3402 = vmatprep.subr.bf16.mxu0 %v3401_v27  ;;  %3333 = vmatmul.mubr.msk.bf16.gmra.mrb[44].mxu1 %vm392_vm0, %v3914_v10  ;;  %v3937_v26 = vld [vmem:[%s4007_s26 + $0x24] sm:$0xff] }
 0x25b   : > { %3404 = vmatpush1.bf16.msra.mxu0 %v3403_v25  ;;  %2050 = vmatprep.mubr.bf16.mxu1 %v3948_v12  ;;  %v3936_v25 = vld [vmem:[%s4007_s26 + $0x20] sm:$0xf]  ;;  %v3094_v27 = vunpack.c.l.bf16 %v3937_v26  ;;  %v3095_v32 = vunpack.c.h.bf16 %v3937_v26 }
 0x25c   : > { %v3407_v6 = vpack.c.bf16 %v458_v30, %v456_v28  ;;  %v3405_v7 = vpack.c.bf16 %v459_v31, %v457_v29  ;;  %v3093_v4 = vunpack.c.l.bf16 %v3936_v25  ;;  %v3870_v31 = vpack.i.bf16 %v3092_v21, %v3091_v20 }
 0x25d   : > { %3681 = vrot.lane.b32.xlu1 %v3690_v3, %s3949_s30  ;;  %3696 = vrot.lane.b32.xlu0 %v4459_v59, %s3950_s9 }
 0x25e   : > { %3406 = vmatprep.subr.bf16.mxu0 %v3405_v7 }
 0x25f   : > { %3408 = vmatpush1.bf16.msra.mxu0 %v3407_v6 }
 0x261   : > { %3686 = vrot.lane.b32.xlu1 %v4459_v59, %s3949_s30  ;;  %3711 = vrot.lane.b32.xlu0 %v3690_v3, %s3952_s11 }
 0x262   : > { %3328 = vmatmul.mubr.msk.bf16.vlgmr.msra.gmra.mrb[24].mxu0 %vm392_vm0, %v3911_v8 }
 0x263   : > { %1625 = vmatprep.mubr.bf16.mxu0 %v3948_v12 }
 0x265   : > { %3701 = vrot.lane.b32.xlu1 %v3690_v3, %s3951_s10  ;;  %3716 = vrot.lane.b32.xlu0 %v4459_v59, %s3952_s11 }
 0x269   : > { %3706 = vrot.lane.b32.xlu1 %v4459_v59, %s3951_s10  ;;  %3721 = vrot.lane.b32.xlu0 %v3720_v34, %s3949_s30 }
 0x26a   : > { %3329 = vmatmul.mubr.msk.bf16.gmra.mrb[28].mxu0 %vm392_vm0, %v3912_v33  ;;  %v3938_v33 = vld [vmem:[%s4007_s26 + $0x2c] sm:$0xf] }
 0x26b   : > { %1895 = vmatprep.mubr.bf16.mxu0 %v3948_v12 }
 0x26d   : > { %3731 = vrot.lane.b32.xlu1 %v3720_v34, %s3950_s9  ;;  %3726 = vrot.lane.b32.xlu0 %v4468_v61, %s3947_s27 }
 0x271   : > { %3736 = vrot.lane.b32.xlu1 %v4444_v51, %s3947_s27  ;;  %3741 = vrot.lane.b32.xlu0 %v4437_v46, %s3953_s12 }
 0x275   : > { %3746 = vrot.lane.b32.xlu1 %v4468_v61, %s3953_s12  ;;  %3751 = vrot.lane.b32.xlu0 %v4444_v51, %s3953_s12 }
 0x279   : > { %3756 = vrot.lane.b32.xlu1 %v3690_v3, %s3947_s27  ;;  %3761 = vrot.lane.b32.xlu0 %v3720_v34, %s3951_s10 }
 0x27d   : > { %3766 = vrot.lane.b32.xlu1 %v3720_v34, %s3952_s11  ;;  %3776 = vrot.lane.b32.xlu0 %v3690_v3, %s3953_s12 }
 0x281   : > { %3771 = vrot.lane.b32.xlu1 %v4459_v59, %s3947_s27  ;;  %3781 = vrot.lane.b32.xlu0 %v4459_v59, %s3953_s12 }
 0x285   : > { %3786 = vrot.lane.b32.xlu1 %v4437_v46, %s3954_s13  ;;  %3791 = vrot.lane.b32.xlu0 %v4468_v61, %s3954_s13 }
 0x289   : > { %3796 = vrot.lane.b32.xlu1 %v4444_v51, %s3954_s13  ;;  %3801 = vrot.lane.b32.xlu0 %v3720_v34, %s3947_s27 }
 0x28d   : > { %3811 = vrot.lane.b32.xlu1 %v3720_v34, %s3953_s12  ;;  %3806 = vrot.lane.b32.xlu0 %v4437_v46, %s3955_s14  ;;  %s3400_s12 = sshll.u32 %s5027_s22, 6 }
 0x291   : > { %3816 = vrot.lane.b32.xlu1 %v4468_v61, %s3955_s14  ;;  %3821 = vrot.lane.b32.xlu0 %v4444_v51, %s3955_s14 }
 0x295   : > { %3826 = vrot.lane.b32.xlu1 %v3690_v3, %s3954_s13  ;;  %3836 = vrot.lane.b32.xlu0 %v3690_v3, %s3955_s14  ;;  %v3865_v3 = vpack.i.bf16 %v3090_v5, %v3089_v62 }
 0x299   : > { %3831 = vrot.lane.b32.xlu1 %v4459_v59, %s3954_s13  ;;  %3841 = vrot.lane.b32.xlu0 %v3720_v34, %s3954_s13  ;;  %s4976_s13 = scalar_lea.vmem %s5017_s6, %s3400_s12 }
 0x29d   : > { %3846 = vrot.lane.b32.xlu1 %v3720_v34, %s3955_s14  ;;  %3851 = vrot.lane.b32.xlu0 %v4459_v59, %s3955_s14  ;;  %v3088_v59 = vunpack.c.l.bf16 %v3933_v58  ;;  %v3096_v34 = vunpack.c.l.bf16 %v3938_v33 }
 0x29f   : > { %v3860_v14 = vpack.i.bf16 %v3088_v59, %v3087_v57 }
 0x2a1   : > { %1517 = vperm.xlu1 %3614, %v3240_v35   ;;  %1522 = vperm.xlu0 %3613, %v3241_v36  }
 0x2a5   : > { %1527 = vperm.xlu1 %3614, %v3242_v37   ;;  %1532 = vperm.xlu0 %3613, %v3243_v38   ;;  %v3875_v38 = vpack.i.bf16 %v3094_v27, %v3093_v4 }
 0x2a9   : > { %3051 = vperm.xlu1 %3614, %v3244_v39   ;;  %3056 = vperm.xlu0 %3613, %v3245_v0  }
 0x2ad   : > { %3061 = vperm.xlu1 %3614, %v3246_v40   ;;  %3066 = vperm.xlu0 %3613, %v3247_v41  }
 0x2b1   : > { %3856 = vrot.lane.b32.xlu1 %v3855_v13, %s3947_s27  ;;  %3861 = vrot.lane.b32.xlu0 %v3860_v14, %s3947_s27 }
 0x2b3   : > { %v3617_v42 = vpop.permute.xlu1 %3616  ;;  %v4584_v43 = vpop.permute.xlu0 %3626 }
 0x2b4   : > { %v3619_v50 = vunpack.i.h.bf16 %v3617_v42  ;;  %v3618_v51 = vunpack.i.l.bf16 %v3617_v42  ;;  %v3629_v52 = vunpack.i.h.bf16 %v4584_v43  ;;  %v3628_v60 = vunpack.i.l.bf16 %v4584_v43 }
 0x2b5   : > { %3866 = vrot.lane.b32.xlu1 %v3865_v3, %s3947_s27  ;;  %3871 = vrot.lane.b32.xlu0 %v3870_v31, %s3947_s27 }
 0x2b6   : > { %v1810_v2 = vsel %vm580_vm2, %v3618_v51, %v3619_v50  ;;  %v1965_v40 = vsel %vm683_vm3, %v3628_v60, %v3629_v52  ;;  %v3880_v50 = vpack.i.bf16 %v3096_v34, %v3095_v32 }
 0x2b7   : > { %v3622_v44 = vpop.permute.xlu1 %3621  ;;  %v3632_v45 = vpop.permute.xlu0 %3631 }
 0x2b8   : > { %v3623_v61 = vunpack.i.l.bf16 %v3622_v44  ;;  %v3624_v22 = vunpack.i.h.bf16 %v3622_v44  ;;  %v3633_v24 = vunpack.i.l.bf16 %v3632_v45  ;;  %v3634_v35 = vunpack.i.h.bf16 %v3632_v45 }
 0x2b9   : > { %3876 = vrot.lane.b32.xlu1 %v3875_v38, %s3947_s27  ;;  %3881 = vrot.lane.b32.xlu0 %v3880_v50, %s3947_s27 }
 0x2ba   : > { %v1809_v28 = vsel %vm580_vm2, %v3623_v61, %v3618_v51  ;;  %v1964_v39 = vsel %vm683_vm3, %v3633_v24, %v3628_v60 }
 0x2bb   : > { %v4586_v46 = vpop.permute.xlu1 %3636  ;;  %v4588_v47 = vpop.permute.xlu0 %3646 }
 0x2bc   : > { %v3639_v59 = vunpack.i.h.bf16 %v4586_v46  ;;  %v3638_v63 = vunpack.i.l.bf16 %v4586_v46  ;;  %v3649_v5 = vunpack.i.h.bf16 %v4588_v47 }
 0x2bf   : > { %v4590_v48 = vpop.permute.xlu1 %3641  ;;  %v4592_v49 = vpop.permute.xlu0 %3651 }
 0x2c0   : > { %v3644_v26 = vunpack.i.h.bf16 %v4590_v48  ;;  %v3643_v27 = vunpack.i.l.bf16 %v4590_v48  ;;  %v3653_v32 = vunpack.i.l.bf16 %v4592_v49  ;;  %v3915_v48 = vld [vmem:[%s5015_s4 + $0x10] sm:$0xff]  }
 0x2c3   : > { %v4600_v9 = vpop.permute.xlu1 %3656  ;;  %v3662_v11 = vpop.permute.xlu0 %3661 }
 0x2c4   : > { %v3664_v23 = vunpack.i.h.bf16 %v3662_v11  ;;  %v3663_v1 = vunpack.i.l.bf16 %v3662_v11  ;;  %v3648_v11 = vunpack.i.l.bf16 %v4588_v47 }
 0x2c6   : > { %v1811_v29 = vsel %vm580_vm2, %v3624_v22, %v3663_v1  ;;  %v1812_v30 = vsel %vm580_vm2, %v3663_v1, %v3664_v23  ;;  %v2446_v50 = vsel %vm987_vm5, %v3648_v11, %v3649_v5 }
 0x2c7   : > { %v3419_v6 = vpack.c.bf16 %v1811_v29, %v1809_v28  ;;  %v3667_v7 = vpop.permute.xlu1 %3666  ;;  %v4611_v8 = vpop.permute.xlu0 %3671  ;;  %v3417_v10 = vpack.c.bf16 %v1812_v30, %v1810_v2 }
 0x2c8   : > { %v3669_v36 = vunpack.i.h.bf16 %v3667_v7  ;;  %v3668_v37 = vunpack.i.l.bf16 %v3667_v7  ;;  %v3674_v55 = vunpack.i.h.bf16 %v4611_v8  ;;  %v3673_v56 = vunpack.i.l.bf16 %v4611_v8 }
 0x2c9   : > { %3418 = vmatprep.subr.bf16.mxu0 %v3417_v10  ;;  %v2128_v10 = vsel %vm794_vm4, %v3638_v63, %v3639_v59 }
 0x2ca   : > { %v1966_v0 = vsel %vm683_vm3, %v3634_v35, %v3668_v37  ;;  %3420 = vmatpush1.bf16.msra.mxu0 %v3419_v6  ;;  %v1967_v41 = vsel %vm683_vm3, %v3668_v37, %v3669_v36  ;;  %v2130_v19 = vsel %vm794_vm4, %v3673_v56, %v3674_v55  ;;  %v2129_v33 = vsel %vm794_vm4, %v3644_v26, %v3673_v56 }
 0x2cb   : > { %v3427_v42 = vpack.c.bf16 %v1966_v0, %v1964_v39  ;;  %v4619_v43 = vpop.permute.xlu1 %3676  ;;  %v3692_v44 = vpop.permute.xlu0 %3691  ;;  %v3425_v45 = vpack.c.bf16 %v1967_v41, %v1965_v40  ;;  %v3433_v34 = vpack.c.bf16 %v2130_v19, %v2128_v10  ;;  %v2127_v0 = vsel %vm794_vm4, %v3643_v27, %v3638_v63 }
 0x2cc   : > { %v3679_v20 = vunpack.i.h.bf16 %v4619_v43  ;;  %v3678_v1 = vunpack.i.l.bf16 %v4619_v43  ;;  %v3694_v2 = vunpack.i.h.bf16 %v3692_v44  ;;  %v3693_v24 = vunpack.i.l.bf16 %v3692_v44 }
 0x2cd   : > { %3426 = vmatprep.subr.bf16.mxu1 %v3425_v45  ;;  %v3654_v40 = vunpack.i.h.bf16 %v4592_v49  ;;  %v3435_v45 = vpack.c.bf16 %v2129_v33, %v2127_v0  ;;  %v3916_v49 = vld [vmem:[%s5015_s4 + $0x20] sm:$0xff]   ;;  %v3659_v55 = vunpack.i.h.bf16 %v4600_v9  ;;  %v3658_v56 = vunpack.i.l.bf16 %v4600_v9 }
 0x2ce   : > { %3428 = vmatpush1.bf16.msra.mxu1 %v3427_v42  ;;  %v1969_v35 = vsel %vm683_vm3, %v3693_v24, %v3694_v2  ;;  %v2448_v39 = vsel %vm987_vm5, %v3678_v1, %v3679_v20 }
 0x2cf   : > { %v3682_v51 = vpop.permute.xlu1 %3681  ;;  %v3697_v53 = vpop.permute.xlu0 %3696 }
 0x2d0   : > { %v3684_v60 = vunpack.i.h.bf16 %v3682_v51  ;;  %v3683_v61 = vunpack.i.l.bf16 %v3682_v51  ;;  %v3698_v3 = vunpack.i.l.bf16 %v3697_v53  ;;  %v3699_v6 = vunpack.i.h.bf16 %v3697_v53 }
 0x2d1   : > { %v2447_v51 = vsel %vm987_vm5, %v3654_v40, %v3678_v1  ;;  %v3449_v53 = vpack.c.bf16 %v2448_v39, %v2446_v50  ;;  %v3919_v39 = vld [vmem:[%s5015_s4 + $0x30] sm:$0xff]  }
 0x2d2   : > { %v1814_v47 = vsel %vm580_vm2, %v3683_v61, %v3684_v60  ;;  %v1968_v36 = vsel %vm683_vm3, %v3698_v3, %v3693_v24 }
 0x2d3   : > { %v3687_v54 = vpop.permute.xlu1 %3686  ;;  %v4624_v52 = vpop.permute.xlu0 %3711 }
 0x2d4   : > { %v3688_v62 = vunpack.i.l.bf16 %v3687_v54  ;;  %v3689_v21 = vunpack.i.h.bf16 %v3687_v54  ;;  %v2445_v54 = vsel %vm987_vm5, %v3653_v32, %v3648_v11  ;;  %v3714_v59 = vunpack.i.h.bf16 %v4624_v52 }
 0x2d5   : > { %v3713_v60 = vunpack.i.l.bf16 %v4624_v52  ;;  %v3451_v63 = vpack.c.bf16 %v2447_v51, %v2445_v54  ;;  %v3917_v52 = vld [vmem:[%s5015_s4 + $0x18] sm:$0xff]  }
 0x2d6   : > { %v1813_v46 = vsel %vm580_vm2, %v3688_v62, %v3683_v61 }
 0x2d7   : > { %v4628_v57 = vpop.permute.xlu1 %3701  ;;  %v4630_v58 = vpop.permute.xlu0 %3716  ;;  %v2450_v1 = vsel %vm987_vm5, %v3713_v60, %v3714_v59 }
 0x2d8   : > { %v3703_v9 = vunpack.i.l.bf16 %v4628_v57  ;;  %v3719_v20 = vunpack.i.h.bf16 %v4630_v58 }
 0x2db   : > { %v4636_v13 = vpop.permute.xlu1 %3706  ;;  %v3722_v14 = vpop.permute.xlu0 %3721 }
 0x2dc   : > { %v3724_v22 = vunpack.i.h.bf16 %v3722_v14  ;;  %v3723_v23 = vunpack.i.l.bf16 %v3722_v14  ;;  %v3704_v14 = vunpack.i.h.bf16 %v4628_v57  ;;  %v3708_v19 = vunpack.i.l.bf16 %v4636_v13 }
 0x2dd   : > { %v2291_v57 = vsel %vm383_vm1, %v3658_v56, %v3659_v55  ;;  %v3709_v2 = vunpack.i.h.bf16 %v4636_v13  ;;  %v3920_v55 = vld [vmem:[%s5015_s4 + $0x50] sm:$0xff]  }
 0x2de   : > { %v1815_v25 = vsel %vm580_vm2, %v3689_v21, %v3723_v23  ;;  %v1816_v4 = vsel %vm580_vm2, %v3723_v23, %v3724_v22  ;;  %v3718_v21 = vunpack.i.l.bf16 %v4630_v58  ;;  %v3918_v58 = vld [vmem:[%s5015_s4 + $0x28] sm:$0xff]   ;;  %v2132_v26 = vsel %vm794_vm4, %v3703_v9, %v3704_v14 }
 0x2df   : > { %v3423_v28 = vpack.c.bf16 %v1815_v25, %v1813_v46  ;;  %v3732_v29 = vpop.permute.xlu1 %3731  ;;  %v4647_v30 = vpop.permute.xlu0 %3726  ;;  %v3421_v31 = vpack.c.bf16 %v1816_v4, %v1814_v47  ;;  %v2131_v25 = vsel %vm794_vm4, %v3708_v19, %v3703_v9 }
 0x2e0   : > { %v3734_v7 = vunpack.i.h.bf16 %v3732_v29  ;;  %v3733_v8 = vunpack.i.l.bf16 %v3732_v29  ;;  %v3729_v5 = vunpack.i.h.bf16 %v4647_v30  ;;  %v3728_v11 = vunpack.i.l.bf16 %v4647_v30 }
 0x2e1   : > { %3422 = vmatprep.subr.bf16.mxu0 %v3421_v31  ;;  %v2449_v30 = vsel %vm987_vm5, %v3718_v21, %v3713_v60 }
 0x2e2   : > { %v1970_v37 = vsel %vm683_vm3, %v3699_v6, %v3733_v8  ;;  %3424 = vmatpush1.bf16.msra.mxu0 %v3423_v28  ;;  %v1971_v38 = vsel %vm683_vm3, %v3733_v8, %v3734_v7  ;;  %v2293_v46 = vsel %vm383_vm1, %v3728_v11, %v3729_v5  ;;  %v3921_v5 = vld [vmem:[%s5015_s4 + $0x38] sm:$0xff]  }
 0x2e3   : > { %v3431_v41 = vpack.c.bf16 %v1970_v37, %v1968_v36  ;;  %v4662_v42 = vpop.permute.xlu1 %3736  ;;  %v4664_v43 = vpop.permute.xlu0 %3741  ;;  %3434 = vmatprep.subr.bf16.mxu0 %v3433_v34  ;;  %v3429_v44 = vpack.c.bf16 %v1971_v38, %v1969_v35  ;;  %v3441_v10 = vpack.c.bf16 %v2293_v46, %v2291_v57 }
 0x2e4   : > { %v3739_v47 = vunpack.i.h.bf16 %v4662_v42  ;;  %v3738_v4 = vunpack.i.l.bf16 %v4662_v42  ;;  %v3744_v32 = vunpack.i.h.bf16 %v4664_v43  ;;  %v3743_v33 = vunpack.i.l.bf16 %v4664_v43 }
 0x2e5   : > { %3340 = vmatmul.mubr.msk.bf16.vlgmr.msra.gmra.mrb[32].mxu0 %vm392_vm0, %v3915_v48  ;;  %3430 = vmatprep.subr.bf16.mxu1 %v3429_v44 }
 0x2e6   : > { %3432 = vmatpush1.bf16.msra.mxu1 %v3431_v41  ;;  %3436 = vmatpush1.bf16.msra.mxu0 %v3435_v45  ;;  %v2290_v35 = vsel %vm383_vm1, %v3738_v4, %v3658_v56  ;;  %v2292_v36 = vsel %vm383_vm1, %v3739_v47, %v3728_v11  ;;  %v2609_v51 = vsel %vm1098_vm6, %v3743_v33, %v3744_v32  ;;  %v3922_v47 = vld [vmem:[%s5015_s4 + $0x58] sm:$0xff]  }
 0x2e7   : > { %v4677_v61 = vpop.permute.xlu1 %3746  ;;  %v4679_v62 = vpop.permute.xlu0 %3751  ;;  %3450 = vmatprep.subr.bf16.mxu1 %v3449_v53  ;;  %1905 = vmatprep.mubr.bf16.mxu0 %v3948_v12  ;;  %v3443_v50 = vpack.c.bf16 %v2292_v36, %v2290_v35 }
 0x2e8   : > { %v3749_v13 = vunpack.i.h.bf16 %v4677_v61  ;;  %v3748_v27 = vunpack.i.l.bf16 %v4677_v61  ;;  %v3754_v37 = vunpack.i.h.bf16 %v4679_v62  ;;  %v3753_v38 = vunpack.i.l.bf16 %v4679_v62 }
 0x2e9   : > { %3348 = vmatmul.mubr.msk.bf16.vlgmr.msra.gmra.mrb[48].mxu1 %vm392_vm0, %v3916_v49 }
 0x2ea   : > { %3452 = vmatpush1.bf16.msra.mxu1 %v3451_v63  ;;  %2060 = vmatprep.mubr.bf16.mxu1 %v3948_v12  ;;  %v2611_v41 = vsel %vm1098_vm6, %v3748_v27, %v3749_v13  ;;  %v2610_v53 = vsel %vm1098_vm6, %v3754_v37, %v3748_v27  ;;  %v2608_v49 = vsel %vm1098_vm6, %v3753_v38, %v3743_v33 }
 0x2eb   : > { %v4694_v22 = vpop.permute.xlu1 %3756  ;;  %v3762_v23 = vpop.permute.xlu0 %3761  ;;  %v3457_v54 = vpack.c.bf16 %v2611_v41, %v2609_v51  ;;  %v3459_v62 = vpack.c.bf16 %v2610_v53, %v2608_v49  ;;  %v3924_v51 = vld [vmem:[%s5015_s4 + $0x60] sm:$0xff]  }
 0x2ec   : > { %v3764_v24 = vunpack.i.h.bf16 %v3762_v23  ;;  %v3763_v3 = vunpack.i.l.bf16 %v3762_v23  ;;  %v3759_v56 = vunpack.i.h.bf16 %v4694_v22  ;;  %v3758_v59 = vunpack.i.l.bf16 %v4694_v22 }
 0x2ed   : > { %3341 = vmatmul.mubr.msk.bf16.gmra.mrb[36].mxu0 %vm392_vm0, %v3917_v52 }
 0x2ee   : > { %v2133_v28 = vsel %vm794_vm4, %v3709_v2, %v3763_v3  ;;  %v2134_v29 = vsel %vm794_vm4, %v3763_v3, %v3764_v24  ;;  %2213 = vmatprep.mubr.bf16.mxu0 %v3948_v12  ;;  %v2295_v22 = vsel %vm383_vm1, %v3758_v59, %v3759_v56 }
 0x2ef   : > { %v3439_v31 = vpack.c.bf16 %v2133_v28, %v2131_v25  ;;  %v3767_v6 = vpop.permute.xlu1 %3766  ;;  %v4714_v7 = vpop.permute.xlu0 %3776  ;;  %v3437_v8 = vpack.c.bf16 %v2134_v29, %v2132_v26 }
 0x2f0   : > { %v3769_v34 = vunpack.i.h.bf16 %v3767_v6  ;;  %v3768_v48 = vunpack.i.l.bf16 %v3767_v6  ;;  %v3779_v24 = vunpack.i.h.bf16 %v4714_v7  ;;  %v3778_v3 = vunpack.i.l.bf16 %v4714_v7 }
 0x2f1   : > { %3349 = vmatmul.mubr.msk.bf16.gmra.mrb[52].mxu1 %vm392_vm0, %v3918_v58  ;;  %3438 = vmatprep.subr.bf16.mxu0 %v3437_v8 }
 0x2f2   : > { %v2451_v0 = vsel %vm987_vm5, %v3719_v20, %v3768_v48  ;;  %3440 = vmatpush1.bf16.msra.mxu0 %v3439_v31  ;;  %v2452_v40 = vsel %vm987_vm5, %v3768_v48, %v3769_v34  ;;  %2531 = vmatprep.mubr.bf16.mxu1 %v3948_v12  ;;  %v3923_v48 = vld [vmem:[%s5015_s4 + $0x40] sm:$0xff]   ;;  %v2613_v35 = vsel %vm1098_vm6, %v3778_v3, %v3779_v24 }
 0x2f3   : > { %v3455_v42 = vpack.c.bf16 %v2451_v0, %v2449_v30  ;;  %v3772_v43 = vpop.permute.xlu1 %3771  ;;  %v4730_v44 = vpop.permute.xlu0 %3781  ;;  %3442 = vmatprep.subr.bf16.mxu0 %v3441_v10  ;;  %v3453_v45 = vpack.c.bf16 %v2452_v40, %v2450_v1 }
 0x2f4   : > { %v3773_v63 = vunpack.i.l.bf16 %v3772_v43  ;;  %v3774_v52 = vunpack.i.h.bf16 %v3772_v43  ;;  %v3783_v25 = vunpack.i.l.bf16 %v4730_v44  ;;  %v3784_v27 = vunpack.i.h.bf16 %v4730_v44 }
 0x2f5   : > { %3356 = vmatmul.mubr.msk.bf16.vlgmr.msra.gmra.mrb[40].mxu0 %vm392_vm0, %v3919_v39  ;;  %3454 = vmatprep.subr.bf16.mxu1 %v3453_v45 }
 0x2f6   : > { %3444 = vmatpush1.bf16.msra.mxu0 %v3443_v50  ;;  %3456 = vmatpush1.bf16.msra.mxu1 %v3455_v42  ;;  %v2294_v46 = vsel %vm383_vm1, %v3773_v63, %v3758_v59  ;;  %v2612_v36 = vsel %vm1098_vm6, %v3783_v25, %v3778_v3 }
 0x2f7   : > { %v3787_v60 = vpop.permute.xlu1 %3786  ;;  %v3792_v61 = vpop.permute.xlu0 %3791  ;;  %3458 = vmatprep.subr.bf16.mxu1 %v3457_v54  ;;  %2223 = vmatprep.mubr.bf16.mxu0 %v3948_v12 }
 0x2f8   : > { %v3789_v11 = vunpack.i.h.bf16 %v3787_v60  ;;  %v3788_v14 = vunpack.i.l.bf16 %v3787_v60  ;;  %v3794_v9 = vunpack.i.h.bf16 %v3792_v61  ;;  %v3793_v19 = vunpack.i.l.bf16 %v3792_v61 }
 0x2f9   : > { %3372 = vmatmul.mubr.msk.bf16.vlgmr.msra.gmra.mrb[56].mxu1 %vm392_vm0, %v3920_v55 }
 0x2fa   : > { %3460 = vmatpush1.bf16.msra.mxu1 %v3459_v62  ;;  %2541 = vmatprep.mubr.bf16.mxu1 %v3948_v12  ;;  %v2772_v26 = vsel %vm1209_vm7, %v3788_v14, %v3789_v11  ;;  %v2774_v13 = vsel %vm1209_vm7, %v3793_v19, %v3794_v9  ;;  %v3925_v62 = vld [vmem:[%s5015_s4 + $0x48] sm:$0xff]  }
 0x2fb   : > { %v3797_v20 = vpop.permute.xlu1 %3796  ;;  %v3802_v21 = vpop.permute.xlu0 %3801  ;;  %v3465_v34 = vpack.c.bf16 %v2774_v13, %v2772_v26 }
 0x2fc   : > { %v3799_v23 = vunpack.i.h.bf16 %v3797_v20  ;;  %v3798_v57 = vunpack.i.l.bf16 %v3797_v20  ;;  %v3804_v1 = vunpack.i.h.bf16 %v3802_v21  ;;  %v3803_v2 = vunpack.i.l.bf16 %v3802_v21 }
 0x2fd   : > { %3357 = vmatmul.mubr.msk.bf16.gmra.mrb[44].mxu0 %vm392_vm0, %v3921_v5 }
 0x2fe   : > { %v2296_v4 = vsel %vm383_vm1, %v3774_v52, %v3803_v2  ;;  %v2297_v58 = vsel %vm383_vm1, %v3803_v2, %v3804_v1  ;;  %2376 = vmatprep.mubr.bf16.mxu0 %v3948_v12  ;;  %v2771_v6 = vsel %vm1209_vm7, %v3798_v57, %v3788_v14  ;;  %v2773_v7 = vsel %vm1209_vm7, %v3799_v23, %v3793_v19  ;;  %v3926_v23 = vld [vmem:[%s5015_s4 + $0x68] sm:$0xff]  }
 0x2ff   : > { %v3447_v28 = vpack.c.bf16 %v2296_v4, %v2294_v46  ;;  %v3812_v29 = vpop.permute.xlu1 %3811  ;;  %v3807_v30 = vpop.permute.xlu0 %3806  ;;  %v3445_v31 = vpack.c.bf16 %v2297_v58, %v2295_v22  ;;  %v3467_v39 = vpack.c.bf16 %v2773_v7, %v2771_v6 }
 0x300   : > { %v3814_v8 = vunpack.i.h.bf16 %v3812_v29  ;;  %v3813_v10 = vunpack.i.l.bf16 %v3812_v29  ;;  %v3809_v32 = vunpack.i.h.bf16 %v3807_v30  ;;  %v3808_v33 = vunpack.i.l.bf16 %v3807_v30 }
 0x301   : > { %3446 = vmatprep.subr.bf16.mxu0 %v3445_v31  ;;  %3373 = vmatmul.mubr.msk.bf16.gmra.mrb[60].mxu1 %vm392_vm0, %v3922_v47 }
 0x302   : > { %v2614_v37 = vsel %vm1098_vm6, %v3784_v27, %v3813_v10  ;;  %3448 = vmatpush1.bf16.msra.mxu0 %v3447_v28  ;;  %v2615_v38 = vsel %vm1098_vm6, %v3813_v10, %v3814_v8  ;;  %2694 = vmatprep.mubr.bf16.mxu1 %v3948_v12  ;;  %v2927_v53 = vsel %vm1312_vm8, %v3808_v33, %v3809_v32  ;;  %v3927_v27 = vld [vmem:[%s5015_s4 + $0x70] sm:$0xff]   ;;  %v3928_v8 = vld [vmem:[%s5015_s4 + $0x80] sm:$0xff]   ;;  %v3929_v10 = vld [vmem:[%s5015_s4 + $0x78] sm:$0xff]  }
 0x303   : > { %v3463_v0 = vpack.c.bf16 %v2614_v37, %v2612_v36  ;;  %v3817_v40 = vpop.permute.xlu1 %3816  ;;  %v3822_v41 = vpop.permute.xlu0 %3821  ;;  %3466 = vmatprep.subr.bf16.mxu0 %v3465_v34  ;;  %v3461_v42 = vpack.c.bf16 %v2615_v38, %v2613_v35  ;;  %v3930_v32 = vld [vmem:[%s5015_s4 + $0x88] sm:$0xff]  }
 0x304   : > { %v3819_v43 = vunpack.i.h.bf16 %v3817_v40  ;;  %v3818_v44 = vunpack.i.l.bf16 %v3817_v40  ;;  %v3824_v45 = vunpack.i.h.bf16 %v3822_v41  ;;  %v3823_v50 = vunpack.i.l.bf16 %v3822_v41 }
 0x305   : > { %3364 = vmatmul.mubr.msk.bf16.vlgmr.msra.gmra.mrb[32].mxu0 %vm392_vm0, %v3923_v48  ;;  %3462 = vmatprep.subr.bf16.mxu1 %v3461_v42 }
 0x306   : > { %v2928_v49 = vsel %vm1312_vm8, %v3824_v45, %v3818_v44  ;;  %v2926_v54 = vsel %vm1312_vm8, %v3823_v50, %v3808_v33  ;;  %3464 = vmatpush1.bf16.msra.mxu1 %v3463_v0  ;;  %3468 = vmatpush1.bf16.msra.mxu0 %v3467_v39  ;;  %v2929_v55 = vsel %vm1312_vm8, %v3818_v44, %v3819_v43 }
 0x307   : > { %v3475_v56 = vpack.c.bf16 %v2928_v49, %v2926_v54  ;;  %v3827_v59 = vpop.permute.xlu1 %3826  ;;  %v3837_v60 = vpop.permute.xlu0 %3836  ;;  %v3473_v61 = vpack.c.bf16 %v2929_v55, %v2927_v53  ;;  %2386 = vmatprep.mubr.bf16.mxu0 %v3948_v12 }
 0x308   : > { %v3829_v63 = vunpack.i.h.bf16 %v3827_v59  ;;  %v3828_v5 = vunpack.i.l.bf16 %v3827_v59  ;;  %v3839_v21 = vunpack.i.h.bf16 %v3837_v60  ;;  %v3838_v22 = vunpack.i.l.bf16 %v3837_v60 }
 0x309   : > { %3380 = vmatmul.mubr.msk.bf16.vlgmr.msra.gmra.mrb[64].mxu1 %vm392_vm0, %v3924_v51  ;;  %3474 = vmatprep.subr.bf16.mxu1 %v3473_v61 }
 0x30a   : > { %3476 = vmatpush1.bf16.msra.mxu1 %v3475_v56  ;;  %2704 = vmatprep.mubr.bf16.mxu1 %v3948_v12  ;;  %v2776_v2 = vsel %vm1209_vm7, %v3828_v5, %v3829_v63  ;;  %v2931_v28 = vsel %vm1312_vm8, %v3838_v22, %v3839_v21 }
 0x30b   : > { %v3832_v11 = vpop.permute.xlu1 %3831  ;;  %v3842_v14 = vpop.permute.xlu0 %3841 }
 0x30c   : > { %v3834_v9 = vunpack.i.h.bf16 %v3832_v11  ;;  %v3833_v19 = vunpack.i.l.bf16 %v3832_v11  ;;  %v3844_v52 = vunpack.i.h.bf16 %v3842_v14  ;;  %v3843_v20 = vunpack.i.l.bf16 %v3842_v14 }
 0x30d   : > { %3365 = vmatmul.mubr.msk.bf16.gmra.mrb[36].mxu0 %vm392_vm0, %v3925_v62 }
 0x30e   : > { %v2775_v57 = vsel %vm1209_vm7, %v3833_v19, %v3828_v5  ;;  %v2777_v1 = vsel %vm1209_vm7, %v3834_v9, %v3843_v20  ;;  %v2778_v24 = vsel %vm1209_vm7, %v3843_v20, %v3844_v52  ;;  %2857 = vmatprep.mubr.bf16.mxu0 %v3948_v12 }
 0x30f   : > { %v3471_v3 = vpack.c.bf16 %v2777_v1, %v2775_v57  ;;  %v3847_v46 = vpop.permute.xlu1 %3846  ;;  %v3852_v25 = vpop.permute.xlu0 %3851  ;;  %v3469_v47 = vpack.c.bf16 %v2778_v24, %v2776_v2 }
 0x310   : > { %v3849_v4 = vunpack.i.h.bf16 %v3847_v46  ;;  %v3848_v58 = vunpack.i.l.bf16 %v3847_v46  ;;  %v3854_v26 = vunpack.i.h.bf16 %v3852_v25  ;;  %v3853_v13 = vunpack.i.l.bf16 %v3852_v25 }
 0x311   : > { %3381 = vmatmul.mubr.msk.bf16.gmra.mrb[68].mxu1 %vm392_vm0, %v3926_v23  ;;  %3470 = vmatprep.subr.bf16.mxu0 %v3469_v47 }
 0x312   : > { %v2932_v29 = vsel %vm1312_vm8, %v3854_v26, %v3848_v58  ;;  %v2930_v30 = vsel %vm1312_vm8, %v3853_v13, %v3838_v22  ;;  %3472 = vmatpush1.bf16.msra.mxu0 %v3471_v3  ;;  %v2933_v31 = vsel %vm1312_vm8, %v3848_v58, %v3849_v4  ;;  %3012 = vmatprep.mubr.bf16.mxu1 %v3948_v12 }
 0x313   : > { %v3479_v6 = vpack.c.bf16 %v2932_v29, %v2930_v30  ;;  %v3477_v7 = vpack.c.bf16 %v2933_v31, %v2931_v28 }
 0x315   : > { %3388 = vmatmul.mubr.msk.bf16.vlgmr.msra.gmra.mrb[32].mxu0 %vm392_vm0, %v3927_v27  ;;  %3478 = vmatprep.subr.bf16.mxu1 %v3477_v7 }
 0x316   : > { %3480 = vmatpush1.bf16.msra.mxu1 %v3479_v6  ;;  %2867 = vmatprep.mubr.bf16.mxu0 %v3948_v12 }
 0x319   : > { %3396 = vmatmul.mubr.msk.bf16.vlgmr.msra.gmra.mrb[72].mxu1 %vm392_vm0, %v3928_v8 }
 0x31a   : > { %3022 = vmatprep.mubr.bf16.mxu1 %v3948_v12 }
 0x31d   : > { %3389 = vmatmul.mubr.msk.bf16.gmra.mrb[36].mxu0 %vm392_vm0, %v3929_v10 }
 0x320   : > { %v4874_v8 = vpop.permute.xlu1 %1517 }
 0x321   : > { %3397 = vmatmul.mubr.msk.bf16.gmra.mrb[76].mxu1 %vm392_vm0, %v3930_v32 }
 0x322   : > { %v1722_v33 = vpop.f32.mrb[40].mxu1 }
 0x323   : > { %v1724_v34 = vpop.f32.mrb[41].mxu1  ;;  %v1741_v51 = vsel %vm4292_vm9, %v1722_v33, 0.0 }
 0x324   : > { %v1726_v48 = vpop.f32.mrb[42].mxu1  ;;  %v1742_v54 = vsel %vm4300_vm11, %v1724_v34, 0.0 }
 0x325   : > { %v1728_v35 = vpop.f32.mrb[43].mxu1  ;;  %v1743_v60 = vsel %vm4292_vm9, %v1726_v48, 0.0 }
 0x326   : > { %v1744_v5 = vsel %vm4300_vm11, %v1728_v35, 0.0 }
 0x32d   : > { %v1732_v36 = vpop.f32.mrb[44].mxu1 }
 0x32e   : > { %v1734_v37 = vpop.f32.mrb[45].mxu1  ;;  %v1745_v52 = vsel %vm4292_vm9, %v1732_v36, 0.0 }
 0x32f   : > { %v1736_v39 = vpop.f32.mrb[46].mxu1  ;;  %v1746_v22 = vsel %vm4300_vm11, %v1734_v37, 0.0 }
 0x330   : > { %v1738_v12 = vpop.f32.mrb[47].mxu1  ;;  %v1747_v2 = vsel %vm4292_vm9, %v1736_v39, 0.0 }
 0x331   : > { %v1748_v25 = vsel %vm4300_vm11, %v1738_v12, 0.0  ;;  %v4882_v12 = vpop.permute.xlu0 %1522 }
 0x335   : > { %v4820_v38 = vpop.f32.mrb[24].mxu0 }
 0x336   : > { %v4822_v0 = vpop.f32.mrb[25].mxu0  ;;  %v1618_v17 = vadd.f32 %v4820_v38, %v4874_v8 }
 0x337   : > { %v4824_v40 = vpop.f32.mrb[26].mxu0 }
 0x338   : > { %v4826_v41 = vpop.f32.mrb[27].mxu0 }
 0x33d   : > { %v4828_v42 = vpop.f32.mrb[28].mxu0 }
 0x33e   : > { %v4830_v43 = vpop.f32.mrb[29].mxu0 }
 0x33f   : > { %v4832_v44 = vpop.f32.mrb[30].mxu0 }
 0x340   : > { %v4834_v45 = vpop.f32.mrb[31].mxu0 }
 0x3bc   : > { %v2052_v50 = vpop.f32.mrb[48].mxu1 }
 0x3bd   : > { %v2071_v53 = vsel %vm4296_vm10, %v2052_v50, 0.0  ;;  %v2054_v49 = vpop.f32.mrb[49].mxu1 }
 0x3be   : > { %v3521_v55 = vadd.f32 %v2071_v53, %v1741_v51  ;;  %v2072_v56 = vsel %vm4304_vm12, %v2054_v49, 0.0  ;;  %v2056_v59 = vpop.f32.mrb[50].mxu1 }
 0x3bf   : > { %v3526_v61 = vadd.f32 %v2072_v56, %v1742_v54  ;;  %v2073_v62 = vsel %vm4296_vm10, %v2056_v59, 0.0  ;;  %v2058_v63 = vpop.f32.mrb[51].mxu1 }
 0x3c0   : > { %v3531_v11 = vadd.f32 %v2073_v62, %v1743_v60  ;;  %v2074_v14 = vsel %vm4304_vm12, %v2058_v63, 0.0 }
 0x3c1   : > { %v3536_v9 = vadd.f32 %v2074_v14, %v1744_v5 }
 0x3c4   : > { %v2062_v19 = vpop.f32.mrb[52].mxu1 }
 0x3c5   : > { %v2075_v20 = vsel %vm4296_vm10, %v2062_v19, 0.0  ;;  %v2064_v21 = vpop.f32.mrb[53].mxu1 }
 0x3c6   : > { %v3541_v23 = vadd.f32 %v2075_v20, %v1745_v52  ;;  %v2076_v57 = vsel %vm4304_vm12, %v2064_v21, 0.0  ;;  %v2066_v1 = vpop.f32.mrb[54].mxu1  ;;  %v4898_v21 = vpop.permute.xlu0 %1532 }
 0x3c7   : > { %v3546_v24 = vadd.f32 %v2076_v57, %v1746_v22  ;;  %v2077_v3 = vsel %vm4296_vm10, %v2066_v1, 0.0  ;;  %v2068_v46 = vpop.f32.mrb[55].mxu1  ;;  %v1632_v16 = vadd.f32 %v4832_v44, %v4898_v21  ;;  %v1634_v18 = vadd.f32 %v4834_v45, %v4898_v21 }
 0x3c8   : > { %v3551_v47 = vadd.f32 %v2077_v3, %v1747_v2  ;;  %v2078_v4 = vsel %vm4304_vm12, %v2068_v46, 0.0  ;;  %v2215_v58 = vpop.f32.mrb[40].mxu0 }
 0x3c9   : > { %v3556_v26 = vadd.f32 %v2078_v4, %v1748_v25  ;;  %v2234_v13 = vsel %vm4292_vm9, %v2215_v58, 0.0  ;;  %v2217_v27 = vpop.f32.mrb[41].mxu0 }
 0x3ca   : > { %v3522_v28 = vadd.f32 %v3521_v55, %v2234_v13  ;;  %v2235_v29 = vsel %vm4300_vm11, %v2217_v27, 0.0  ;;  %v2219_v30 = vpop.f32.mrb[42].mxu0  ;;  %v4910_v13 = vpop.permute.xlu0 %3056 }
 0x3cb   : > { %v3527_v31 = vadd.f32 %v3526_v61, %v2235_v29  ;;  %v2236_v6 = vsel %vm4292_vm9, %v2219_v30, 0.0  ;;  %v2221_v7 = vpop.f32.mrb[43].mxu0  ;;  %v4890_v61 = vpop.permute.xlu1 %1527 }
 0x3cc   : > { %v3532_v10 = vadd.f32 %v3531_v11, %v2236_v6  ;;  %v2237_v32 = vsel %vm4300_vm11, %v2221_v7, 0.0  ;;  %v2533_v33 = vpop.f32.mrb[56].mxu1 }
 0x3cd   : > { %v3537_v34 = vadd.f32 %v3536_v9, %v2237_v32  ;;  %v2552_v48 = vsel %vm4296_vm10, %v2533_v33, 0.0  ;;  %v2535_v35 = vpop.f32.mrb[57].mxu1 }
 0x3ce   : > { %v3523_v36 = vadd.f32 %v3522_v28, %v2552_v48  ;;  %v2553_v37 = vsel %vm4304_vm12, %v2535_v35, 0.0  ;;  %v2537_v39 = vpop.f32.mrb[58].mxu1  ;;  %v4922_v35 = vpop.permute.xlu0 %3066 }
 0x3cf   : > { %v3528_v50 = vadd.f32 %v3527_v31, %v2553_v37  ;;  %v2554_v51 = vsel %vm4296_vm10, %v2537_v39, 0.0  ;;  %v2539_v53 = vpop.f32.mrb[59].mxu1 }
 0x3d0   : > { %v3533_v49 = vadd.f32 %v3532_v10, %v2554_v51  ;;  %v2555_v54 = vsel %vm4304_vm12, %v2539_v53, 0.0  ;;  %v2225_v55 = vpop.f32.mrb[44].mxu0 }
 0x3d1   : > { %v3538_v56 = vadd.f32 %v3537_v34, %v2555_v54  ;;  %v2238_v59 = vsel %vm4292_vm9, %v2225_v55, 0.0  ;;  %v2227_v60 = vpop.f32.mrb[45].mxu0 }
 0x3d2   : > { %v3542_v62 = vadd.f32 %v3541_v23, %v2238_v59  ;;  %v2239_v63 = vsel %vm4300_vm11, %v2227_v60, 0.0  ;;  %v2229_v5 = vpop.f32.mrb[46].mxu0  ;;  %v3862_v54 = vpop.permute.xlu0 %3861 }
 0x3d3   : > { %v3547_v11 = vadd.f32 %v3546_v24, %v2239_v63  ;;  %v2240_v14 = vsel %vm4292_vm9, %v2229_v5, 0.0  ;;  %v2231_v9 = vpop.f32.mrb[47].mxu0 }
 0x3d4   : > { %v3552_v19 = vadd.f32 %v3551_v47, %v2240_v14  ;;  %v2241_v52 = vsel %vm4300_vm11, %v2231_v9, 0.0  ;;  %v2543_v20 = vpop.f32.mrb[60].mxu1  ;;  %v4906_v47 = vpop.permute.xlu1 %3051 }
 0x3d5   : > { %v3557_v22 = vadd.f32 %v3556_v26, %v2241_v52  ;;  %v2556_v23 = vsel %vm4296_vm10, %v2543_v20, 0.0  ;;  %v2545_v57 = vpop.f32.mrb[61].mxu1 }
 0x3d6   : > { %v3543_v1 = vadd.f32 %v3542_v62, %v2556_v23  ;;  %v2557_v2 = vsel %vm4304_vm12, %v2545_v57, 0.0  ;;  %v2547_v24 = vpop.f32.mrb[62].mxu1  ;;  %v3863_v57 = vunpack.i.l.bf16 %v3862_v54 }
 0x3d7   : > { %v3548_v3 = vadd.f32 %v3547_v11, %v2557_v2  ;;  %v2558_v46 = vsel %vm4296_vm10, %v2547_v24, 0.0  ;;  %v2549_v25 = vpop.f32.mrb[63].mxu1  ;;  %v3864_v24 = vunpack.i.h.bf16 %v3862_v54 }
 0x3d8   : > { %v3553_v4 = vadd.f32 %v3552_v19, %v2558_v46  ;;  %v2559_v58 = vsel %vm4304_vm12, %v2549_v25, 0.0  ;;  %v4914_v30 = vpop.permute.xlu1 %3061  ;;  %v4932_v46 = vpop.permute.xlu0 %3871  ;;  %v1620_v25 = vadd.f32 %v4822_v0, %v4874_v8 }
 0x3d9   : > { %v3558_v26 = vadd.f32 %v3557_v22, %v2559_v58  ;;  %v3873_v54 = vunpack.i.l.bf16 %v4932_v46 }
 0x3dc   : > { %v2696_v27 = vpop.f32.mrb[64].mxu1  ;;  %v3857_v39 = vpop.permute.xlu1 %3856 }
 0x3dd   : > { %v2715_v28 = vsel %vm4292_vm9, %v2696_v27, 0.0  ;;  %v2698_v29 = vpop.f32.mrb[65].mxu1  ;;  %v3859_v22 = vunpack.i.h.bf16 %v3857_v39  ;;  %v3858_v23 = vunpack.i.l.bf16 %v3857_v39  ;;  %v1624_v27 = vadd.f32 %v4826_v41, %v4882_v12 }
 0x3de   : > { %v3524_v31 = vadd.f32 %v3523_v36, %v2715_v28  ;;  %v2716_v6 = vsel %vm4300_vm11, %v2698_v29, 0.0  ;;  %v2700_v7 = vpop.f32.mrb[66].mxu1  ;;  %v4944_v28 = vadd.f32 %v4828_v42, %v4890_v61  ;;  %v4948_v29 = vadd.f32 %v4830_v43, %v4890_v61 }
 0x3df   : > { %v3529_v10 = vadd.f32 %v3528_v50, %v2716_v6  ;;  %v2717_v32 = vsel %vm4292_vm9, %v2700_v7, 0.0  ;;  %v2702_v33 = vpop.f32.mrb[67].mxu1  ;;  %v3134_v41 = vsel %vm383_vm1, %v3859_v22, %v3863_v57 }
 0x3e0   : > { %v3534_v34 = vadd.f32 %v3533_v49, %v2717_v32  ;;  %v2718_v48 = vsel %vm4300_vm11, %v2702_v33, 0.0  ;;  %v3867_v11 = vpop.permute.xlu1 %3866 }
 0x3e1   : > { %v3539_v37 = vadd.f32 %v3538_v56, %v2718_v48  ;;  %v3869_v15 = vunpack.i.h.bf16 %v3867_v11 }
 0x3e4   : > { %v2706_v51 = vpop.f32.mrb[68].mxu1 }
 0x3e5   : > { %v2719_v36 = vsel %vm4292_vm9, %v2706_v51, 0.0  ;;  %v2708_v53 = vpop.f32.mrb[69].mxu1 }
 0x3e6   : > { %v3544_v55 = vadd.f32 %v3543_v1, %v2719_v36  ;;  %v2720_v50 = vsel %vm4300_vm11, %v2708_v53, 0.0  ;;  %v2710_v59 = vpop.f32.mrb[70].mxu1 }
 0x3e7   : > { %v3549_v60 = vadd.f32 %v3548_v3, %v2720_v50  ;;  %v2721_v49 = vsel %vm4292_vm9, %v2710_v59, 0.0  ;;  %v2712_v62 = vpop.f32.mrb[71].mxu1  ;;  %v3868_v3 = vunpack.i.l.bf16 %v3867_v11  ;;  %v3882_v50 = vpop.permute.xlu0 %3881 }
 0x3e8   : > { %v3554_v63 = vadd.f32 %v3553_v4, %v2721_v49  ;;  %v2722_v56 = vsel %vm4300_vm11, %v2712_v62, 0.0  ;;  %v2859_v5 = vpop.f32.mrb[32].mxu0  ;;  %v1622_v4 = vadd.f32 %v4824_v40, %v4882_v12  ;;  %v3883_v57 = vunpack.i.l.bf16 %v3882_v50 }
 0x3e9   : > { %v3559_v14 = vadd.f32 %v3558_v26, %v2722_v56  ;;  %v3525_v9 = vadd.f32 %v3524_v31, %v2859_v5  ;;  %v2861_v19 = vpop.f32.mrb[33].mxu0  ;;  %v3133_v31 = vsel %vm383_vm1, %v3858_v23, %v3859_v22  ;;  %v3135_v43 = vsel %vm383_vm1, %v3864_v24, %v3868_v3 }
 0x3ea   : > { %v3530_v52 = vadd.f32 %v3529_v10, %v2861_v19  ;;  %v2863_v20 = vpop.f32.mrb[34].mxu0  ;;  %v3136_v61 = vsel %vm383_vm1, %v3868_v3, %v3869_v15  ;;  %v4960_v10 = vpop.permute.xlu1 %3876 }
 0x3eb   : > { %v3535_v1 = vadd.f32 %v3534_v34, %v2863_v20  ;;  %v2865_v2 = vpop.f32.mrb[35].mxu0  ;;  %v3878_v5 = vunpack.i.l.bf16 %v4960_v10 }
 0x3ec   : > { %v3540_v58 = vadd.f32 %v3539_v37, %v2865_v2  ;;  %v3014_v26 = vpop.f32.mrb[72].mxu1  ;;  %v3874_v37 = vunpack.i.h.bf16 %v4932_v46  ;;  %v3884_v2 = vunpack.i.h.bf16 %v3882_v50 }
 0x3ed   : > { %v3033_v38 = vsel %vm4296_vm10, %v3014_v26, 0.0  ;;  %v3016_v0 = vpop.f32.mrb[73].mxu1 }
 0x3ee   : > { %v3041_v8 = vadd.f32 %v3525_v9, %v3033_v38  ;;  %v3034_v40 = vsel %vm4304_vm12, %v3016_v0, 0.0  ;;  %v3018_v6 = vpop.f32.mrb[74].mxu1 }
 0x3ef   : > { %v3042_v12 = vadd.f32 %v3530_v52, %v3034_v40  ;;  %v3035_v42 = vsel %vm4296_vm10, %v3018_v6, 0.0  ;;  %v3020_v7 = vpop.f32.mrb[75].mxu1  ;;  %v3137_v6 = vsel %vm383_vm1, %v3873_v54, %v3874_v37 }
 0x3f0   : > { %v3069_v32 = vadd.f32 %v4906_v47, %v3041_v8  ;;  %v3043_v33 = vadd.f32 %v3535_v1, %v3035_v42  ;;  %v3036_v34 = vsel %vm4304_vm12, %v3020_v7, 0.0  ;;  %v2869_v48 = vpop.f32.mrb[36].mxu0 }
 0x3f1   : > { %v3070_v39 = vadd.f32 %v4906_v47, %v3042_v12  ;;  %v3044_v51 = vadd.f32 %v3540_v58, %v3036_v34  ;;  %v3545_v36 = vadd.f32 %v3544_v55, %v2869_v48  ;;  %v2871_v53 = vpop.f32.mrb[37].mxu0  ;;  %v3879_v47 = vunpack.i.h.bf16 %v4960_v10 }
 0x3f2   : > { %v3077_v59 = vmul.f32 %v3069_v32, %v1618_v17  ;;  %v3071_v49 = vadd.f32 %v4910_v13, %v3043_v33  ;;  %v3550_v62 = vadd.f32 %v3549_v60, %v2871_v53  ;;  %v2873_v56 = vpop.f32.mrb[38].mxu0  ;;  %v3140_v10 = vsel %vm383_vm1, %v3883_v57, %v3884_v2 }
 0x3f3   : > { %v3078_v11 = vmul.f32 %v3070_v39, %v1620_v25  ;;  %v3072_v9 = vadd.f32 %v4910_v13, %v3044_v51  ;;  %v3555_v19 = vadd.f32 %v3554_v63, %v2873_v56  ;;  %v2875_v52 = vpop.f32.mrb[39].mxu0 }
 0x3f4   : > { %v3149_v55 = vadd.f32 %v3133_v31, %v3077_v59  ;;  %v3079_v20 = vmul.f32 %v3071_v49, %v1622_v4  ;;  %v3560_v22 = vadd.f32 %v3559_v14, %v2875_v52  ;;  %v3024_v23 = vpop.f32.mrb[76].mxu1 }
 0x3f5   : > { %v3080_v60 = vmul.f32 %v3072_v9, %v1624_v27  ;;  %v3150_v1 = vadd.f32 %v3134_v41, %v3078_v11  ;;  %v3037_v13 = vsel %vm4296_vm10, %v3024_v23, 0.0  ;;  %v3026_v63 = vpop.f32.mrb[77].mxu1 }
 0x3f6   : > { %v3157_v24 = vmax.f32 %v3149_v55, 0.0  ;;  %v3151_v15 = vadd.f32 %v3135_v43, %v3079_v20  ;;  %v3045_v3 = vadd.f32 %v3545_v36, %v3037_v13  ;;  %v3038_v14 = vsel %vm4304_vm12, %v3026_v63, 0.0  ;;  %v3028_v46 = vpop.f32.mrb[78].mxu1 }
 0x3f7   : > { %v3158_v17 = vmax.f32 %v3150_v1, 0.0  ;;  %v3152_v25 = vadd.f32 %v3136_v61, %v3080_v60  ;;  %v3046_v4 = vadd.f32 %v3550_v62, %v3038_v14  ;;  %v3039_v58 = vsel %vm4296_vm10, %v3028_v46, 0.0  ;;  %v3030_v26 = vpop.f32.mrb[79].mxu1 }
 0x3f8   : > { %3165 = vst [vmem:[%s4976_s13] sm:$0xff] %v3157_v24  ;;  %v3159_v27 = vmax.f32 %v3151_v15, 0.0  ;;  %v3073_v38 = vadd.f32 %v4914_v30, %v3045_v3  ;;  %v3047_v0 = vadd.f32 %v3555_v19, %v3039_v58  ;;  %v3040_v8 = vsel %vm4304_vm12, %v3030_v26, 0.0 }
 0x3f9   : > { %3166 = vst [vmem:[%s4976_s13 + $0x8] sm:$0xff] %v3158_v17  ;;  %v3160_v40 = vmax.f32 %v3152_v25, 0.0  ;;  %v3074_v31 = vadd.f32 %v4914_v30, %v3046_v4  ;;  %v3048_v41 = vadd.f32 %v3560_v22, %v3040_v8  ;;  %v3139_v43 = vsel %vm383_vm1, %v3879_v47, %v3883_v57 }
 0x3fa   : > { %3167 = vst [vmem:[%s4976_s13 + $0x10] sm:$0xff] %v3159_v27  ;;  %v3081_v12 = vmul.f32 %v3073_v38, %v4944_v28  ;;  %v3075_v42 = vadd.f32 %v4922_v35, %v3047_v0  ;;  %v3138_v28 = vsel %vm383_vm1, %v3874_v37, %v3878_v5 }
 0x3fb   : > { %3168 = vst [vmem:[%s4976_s13 + $0x18] sm:$0xff] %v3160_v40  ;;  %v3082_v7 = vmul.f32 %v3074_v31, %v4948_v29  ;;  %v3076_v30 = vadd.f32 %v4922_v35, %v3048_v41 }
 0x3fc   : > { %v3153_v44 = vadd.f32 %v3137_v6, %v3081_v12  ;;  %v3083_v61 = vmul.f32 %v3075_v42, %v1632_v16 }
 0x3fd   : > { %v3084_v32 = vmul.f32 %v3076_v30, %v1634_v18  ;;  %v3154_v33 = vadd.f32 %v3138_v28, %v3082_v7 }
 0x3fe   : > { %v3161_v34 = vmax.f32 %v3153_v44, 0.0  ;;  %v3155_v45 = vadd.f32 %v3139_v43, %v3083_v61 }
 0x3ff   : > { %v3162_v21 = vmax.f32 %v3154_v33, 0.0  ;;  %v3156_v48 = vadd.f32 %v3140_v10, %v3084_v32 }
 0x400   : > { %3169 = vst [vmem:[%s4976_s13 + $0x20] sm:$0xff] %v3161_v34  ;;  %v3163_v29 = vmax.f32 %v3155_v45, 0.0 }
 0x401   : > { %3170 = vst [vmem:[%s4976_s13 + $0x28] sm:$0xff] %v3162_v21  ;;  %v3164_v35 = vmax.f32 %v3156_v48, 0.0 }
 0x402   : > { %3171 = vst [vmem:[%s4976_s13 + $0x30] sm:$0xff] %v3163_v29 }
 0x403   : > { %3172 = vst [vmem:[%s4976_s13 + $0x38] sm:$0xff] %v3164_v35 }
 0x404 PF: > { %s16_s21 = sadd.s32 1, %s3945_s21  }
 0x405   : > { %p13_p4 = scmp.ge.s32.totalorder %s16_s21, 10  }
 0x407   :  { %15 = sbr.rel (!%p13_p4) target bundleno = 1 (0x1), region = 93 }

</bundles_post_ra>
